<compile_context>
chip_gen: v7x
topology: tpu7x:2x2x1
jax: 0.10.0
libtpu: 0.0.40
codegen_flags: <defaults>
</compile_context>

<pallas_src>
import functools

import numpy as np
import jax
import jax.numpy as jnp
from jax.experimental import pallas as pl
from jax.experimental.pallas import tpu as pltpu


def _round_up(x, m):
    return (x + m - 1) // m * m


# Tap order: t = (dh+1)*3 + (dw+1)  ==  kh*3 + kw of the HWIO weight.
_TAPS = tuple((dh, dw) for dh in (-1, 0, 1) for dw in (-1, 0, 1))


# ---------------------------------------------------------------------------
# Host-side weight prep: block-diagonal (two chains) 3x3 conv weights,
# flattened to match the on-chip im2col stack, bias folded in as last column.
#   returns (2*Cout, 9*cin_pad + 1), cin_pad = round_up(2*Cin, 8)
#   tap t occupies cols [t*cin_pad, t*cin_pad + 2*Cin): chain-A then chain-B.
# ---------------------------------------------------------------------------
def _stack_layer_weights(w_a, b_a, w_b, b_b):
    kh, kw, cin, cout = w_a.shape
    cs = 2 * cin
    cin_pad = _round_up(cs, 8)
    wa = jnp.transpose(w_a, (0, 1, 3, 2)).reshape(kh * kw, cout, cin)
    wb = jnp.transpose(w_b, (0, 1, 3, 2)).reshape(kh * kw, cout, cin)
    z = jnp.zeros((kh * kw, cout, cin), w_a.dtype)
    blk = jnp.concatenate(
        [jnp.concatenate([wa, z], axis=2),      # chain-A output rows
         jnp.concatenate([z, wb], axis=2)],     # chain-B output rows
        axis=1)                                  # (9, 2*cout, 2*cin)
    blk = jnp.pad(blk, ((0, 0), (0, 0), (0, cin_pad - cs)))
    wflat = jnp.transpose(blk, (1, 0, 2)).reshape(2 * cout, kh * kw * cin_pad)
    bias = jnp.concatenate([b_a, b_b]).reshape(2 * cout, 1)
    return jnp.concatenate([wflat, bias], axis=1).astype(jnp.float32)


# ---------------------------------------------------------------------------
# Fused kernel: whole CycleGAN generator forward (both chains, all 8 convs).
# Activations are (stacked_channels, L_pad) with batch*spatial on lanes.
# ---------------------------------------------------------------------------
def _cyclegan_kernel(edge_ref, x_ref, w1a_ref, w2a_ref, w1b_ref, w2b_ref,
                     mid_ref, fin_ref, im_ref, *, img_w):
    lpad = x_ref.shape[-1]

    # Boundary-tap masks built on-chip from 4 precomputed flag rows (1, lpad):
    # ok_u: not top row, ok_d: not bottom row, ok_l: not left col, ok_r: right.
    ok_u = edge_ref[0:1, :]
    ok_d = edge_ref[1:2, :]
    ok_l = edge_ref[2:3, :]
    ok_r = edge_ref[3:4, :]

    def tap_mask(dh, dw):
        m = None
        if dh == -1:
            m = ok_u
        elif dh == 1:
            m = ok_d
        if dw == -1:
            m = ok_l if m is None else m * ok_l
        elif dw == 1:
            m = ok_r if m is None else m * ok_r
        return m                        # None -> no masking needed (center)

    masks = [tap_mask(dh, dw) for dh, dw in _TAPS]
    ones_row = jnp.ones((1, lpad), jnp.float32)

    # Clear the im2col scratch once: gap rows (zero weight columns) must hold
    # finite values so 0 * garbage cannot produce NaN.
    im_ref[...] = jnp.zeros_like(im_ref)

    def conv3x3(x, w_ref, act):
        """x: (2*Cin, lpad) f32 value -> (2*Cout, lpad) f32 value."""
        cs = x.shape[0]
        cin_pad = _round_up(cs, 8)          # sublane-aligned tap stride
        for t, (dh, dw) in enumerate(_TAPS):
            d = dh * img_w + dw             # flat lane offset of the tap
            if d == 0:
                xs = x                      # center tap: no shift / no mask
            else:
                # pltpu.roll follows jnp.roll: out[p] = in[(p - shift) % L],
                # so shift = -d gives xs[p] = x[p + d].
                xs = pltpu.roll(x, (-d) % lpad, axis=1) * masks[t]
            im_ref[pl.ds(t * cin_pad, cs), :] = xs
        im_ref[pl.ds(9 * cin_pad, 1), :] = ones_row     # bias row
        k = 9 * cin_pad + 1
        y = jnp.dot(w_ref[...], im_ref[pl.ds(0, k), :],
                    preferred_element_type=jnp.float32)  # single MXU matmul
        return jnp.maximum(y, 0.0) if act == "relu" else jnp.tanh(y)

    x = x_ref[...].astype(jnp.float32)
    h = conv3x3(x, w1a_ref, "relu")        # gen-A layer 1 (both chains)
    mid = conv3x3(h, w2a_ref, "tanh")      # gen-A layer 2 -> fake images
    mid_ref[...] = mid.astype(mid_ref.dtype)
    h2 = conv3x3(mid, w1b_ref, "relu")     # gen-B layer 1 (both chains)
    fin = conv3x3(h2, w2b_ref, "tanh")     # gen-B layer 2 -> reconstructions
    fin_ref[...] = fin.astype(fin_ref.dtype)


# ---------------------------------------------------------------------------
# Generator params (simplified CycleGAN generator).
# ---------------------------------------------------------------------------
def init_generator(key, in_ch=3, out_ch=3, ngf=8, dtype=jnp.float32):
    k1, k2, k3, k4 = jax.random.split(key, 4)
    return {
        "w1": jax.random.normal(k1, (3, 3, in_ch, ngf), dtype) * 0.1,
        "b1": jax.random.normal(k2, (ngf,), dtype) * 0.01,
        "w2": jax.random.normal(k3, (3, 3, ngf, out_ch), dtype) * 0.1,
        "b2": jax.random.normal(k4, (out_ch,), dtype) * 0.01,
    }


# ---------------------------------------------------------------------------
# CycleGan.forward equivalent (both real_src and real_targ provided).
# ---------------------------------------------------------------------------
def cyclegan_forward(gen_src_targ, gen_targ_src, real_src_nchw, real_targ_nchw):
    N, C, H, W = real_src_nchw.shape
    L = N * H * W
    lpad = _round_up(L, 128)               # lane-dense, unmasked stores
    dtype = real_src_nchw.dtype

    # NCHW -> (C, N*H*W): channels on sublanes, batch*spatial dense on lanes.
    to_lanes = lambda t: jnp.transpose(t, (1, 0, 2, 3)).reshape(C, L)
    x = jnp.concatenate([to_lanes(real_src_nchw),      # chain 0 channels
                         to_lanes(real_targ_nchw)], 0)  # chain 1 channels
    if lpad != L:
        x = jnp.pad(x, ((0, 0), (0, lpad - L)))

    # 4 boundary-flag rows (tiny) replace the old (9, L) f32 mask stream.
    pos = np.arange(lpad)
    wi = pos % W
    hi = (pos // W) % H
    edge = jnp.asarray(np.stack([hi > 0, hi < H - 1, wi > 0, wi < W - 1]
                                ).astype(np.float32))   # (4, lpad)

    # chain 0: A = gen_src_targ, B = gen_targ_src  (src -> fake_targ -> src_rec)
    # chain 1: A = gen_targ_src, B = gen_src_targ  (targ -> fake_src -> targ_rec)
    gst, gts = gen_src_targ, gen_targ_src
    w1a = _stack_layer_weights(gst["w1"], gst["b1"], gts["w1"], gts["b1"])
    w2a = _stack_layer_weights(gst["w2"], gst["b2"], gts["w2"], gts["b2"])
    w1b = _stack_layer_weights(gts["w1"], gts["b1"], gst["w1"], gst["b1"])
    w2b = _stack_layer_weights(gts["w2"], gts["b2"], gst["w2"], gst["b2"])

    ngf = gst["w1"].shape[-1]
    k_rows = _round_up(9 * _round_up(2 * max(C, ngf), 8) + 1, 8)

    kernel = functools.partial(_cyclegan_kernel, img_w=W)
    mid, fin = pl.pallas_call(
        kernel,
        out_shape=(jax.ShapeDtypeStruct((2 * C, lpad), dtype),
                   jax.ShapeDtypeStruct((2 * C, lpad), dtype)),
        scratch_shapes=[pltpu.VMEM((k_rows, lpad), jnp.float32)],
    )(edge, x, w1a, w2a, w1b, w2b)

    # (C, N*H*W) -> NCHW
    def from_lanes(flat):
        return jnp.transpose(flat[:, :L].reshape(C, N, H, W), (1, 0, 2, 3))

    return {
        "fake_targ": from_lanes(mid[:C]),
        "fake_src": from_lanes(mid[C:]),
        "src_reconstruct": from_lanes(fin[:C]),
        "targ_reconstruct": from_lanes(fin[C:]),
    }


# ---------------------------------------------------------------------------
# Pure-JAX reference for validation.
# ---------------------------------------------------------------------------
def _conv3x3_ref(x_nhwc, w_hwio, b, act):
    y = jax.lax.conv_general_dilated(
        x_nhwc, w_hwio, window_strides=(1, 1), padding="SAME",
        dimension_numbers=("NHWC", "HWIO", "NHWC"))
    y = y + b.reshape(1, 1, 1, -1)
    if act == "relu":
        y = jnp.maximum(y, 0.0)
    elif act == "tanh":
        y = jnp.tanh(y)
    return y


def _generator_ref(p, x_nhwc):
    h = _conv3x3_ref(x_nhwc, p["w1"], p["b1"], "relu")
    return _conv3x3_ref(h, p["w2"], p["b2"], "tanh")


def _cyclegan_forward_ref(gst, gts, real_src, real_targ):
    to_nhwc = lambda t: jnp.transpose(t, (0, 2, 3, 1))
    to_nchw = lambda t: jnp.transpose(t, (0, 3, 1, 2))
    rs, rt = to_nhwc(real_src), to_nhwc(real_targ)
    fake_targ = _generator_ref(gst, rs)
    src_rec = _generator_ref(gts, fake_targ)
    fake_src = _generator_ref(gts, rt)
    targ_rec = _generator_ref(gst, fake_src)
    return {"fake_targ": to_nchw(fake_targ), "src_reconstruct": to_nchw(src_rec),
            "fake_src": to_nchw(fake_src), "targ_reconstruct": to_nchw(targ_rec)}


if __name__ == "__main__":
    key = jax.random.PRNGKey(0)
    k_gst, k_gts, k_src, k_targ = jax.random.split(key, 4)

    gen_src_targ = init_generator(k_gst)   # Generator(3, 3, [])
    gen_targ_src = init_generator(k_gts)   # Generator(3, 3, [])

    N, C, H, W = 2, 3, 16, 16
    real_src = jax.random.uniform(k_src, (N, C, H, W), jnp.float32, -1.0, 1.0)
    real_targ = jax.random.uniform(k_targ, (N, C, H, W), jnp.float32, -1.0, 1.0)

    fwd = jax.jit(cyclegan_forward)
    outs = fwd(gen_src_targ, gen_targ_src, real_src, real_targ)
    jax.block_until_ready(outs)

    refs = _cyclegan_forward_ref(gen_src_targ, gen_targ_src, real_src, real_targ)
    for name in ("fake_targ", "src_reconstruct", "fake_src", "targ_reconstruct"):
        assert outs[name].shape == (N, C, H, W), (name, outs[name].shape)
        assert jnp.allclose(outs[name], refs[name], atol=1e-4, rtol=1e-4), name

    print("KERNEL_OK")
</pallas_src>

<mosaic_0001>
module attributes {stable_mosaic.version = 11 : i64} {
  func.func @_cyclegan_kernel(%arg0: memref<4x512xf32, #tpu.memory_space<vmem>>, %arg1: memref<6x512xf32, #tpu.memory_space<vmem>>, %arg2: memref<16x73xf32, #tpu.memory_space<vmem>>, %arg3: memref<6x145xf32, #tpu.memory_space<vmem>>, %arg4: memref<16x73xf32, #tpu.memory_space<vmem>>, %arg5: memref<6x145xf32, #tpu.memory_space<vmem>>, %arg6: memref<6x512xf32, #tpu.memory_space<vmem>>, %arg7: memref<6x512xf32, #tpu.memory_space<vmem>>, %arg8: memref<152x512xf32, #tpu.memory_space<vmem>>) attributes {dimension_semantics = [], scalar_prefetch = 0 : i64, scratch_operands = 1 : i64, tpu.core_type = #tpu.core_type<tc>} {
    %c0 = arith.constant 0 : index
    %c0_0 = arith.constant 0 : index
    %0 = vector.load %arg0[%c0, %c0_0] : memref<4x512xf32, #tpu.memory_space<vmem>>, vector<1x512xf32>
    %c1 = arith.constant 1 : index
    %c0_1 = arith.constant 0 : index
    %1 = vector.load %arg0[%c1, %c0_1] : memref<4x512xf32, #tpu.memory_space<vmem>>, vector<1x512xf32>
    %c2 = arith.constant 2 : index
    %c0_2 = arith.constant 0 : index
    %2 = vector.load %arg0[%c2, %c0_2] : memref<4x512xf32, #tpu.memory_space<vmem>>, vector<1x512xf32>
    %c3 = arith.constant 3 : index
    %c0_3 = arith.constant 0 : index
    %3 = vector.load %arg0[%c3, %c0_3] : memref<4x512xf32, #tpu.memory_space<vmem>>, vector<1x512xf32>
    %4 = arith.mulf %0, %2 : vector<1x512xf32>
    %5 = arith.mulf %0, %3 : vector<1x512xf32>
    %6 = arith.mulf %1, %2 : vector<1x512xf32>
    %7 = arith.mulf %1, %3 : vector<1x512xf32>
    %cst = arith.constant 1.000000e+00 : f32
    %8 = vector.broadcast %cst : f32 to vector<1x512xf32>
    %cst_4 = arith.constant 0.000000e+00 : f32
    %9 = vector.broadcast %cst_4 : f32 to vector<152x512xf32>
    %c0_5 = arith.constant 0 : index
    %c0_6 = arith.constant 0 : index
    %10 = vector.load %arg8[%c0_5, %c0_6] : memref<152x512xf32, #tpu.memory_space<vmem>>, vector<152x512xf32>
    tpu.vector_store %arg8[%c0_5, %c0_6], %9 {strides = array<i32>} : memref<152x512xf32, #tpu.memory_space<vmem>>, vector<152x512xf32>,
    %c0_7 = arith.constant 0 : index
    %c0_8 = arith.constant 0 : index
    %11 = vector.load %arg1[%c0_7, %c0_8] : memref<6x512xf32, #tpu.memory_space<vmem>>, vector<6x512xf32>
    %c17_i32 = arith.constant 17 : i32
    %12 = tpu.dynamic_rotate %11 by %c17_i32 dim 1 : vector<6x512xf32>, i32 -> vector<6x512xf32>
    %13 = vector.broadcast %4 : vector<1x512xf32> to vector<6x512xf32>
    %14 = arith.mulf %12, %13 : vector<6x512xf32>
    %c0_9 = arith.constant 0 : index
    %c0_10 = arith.constant 0 : index
    %15 = vector.load %arg8[%c0_9, %c0_10] : memref<152x512xf32, #tpu.memory_space<vmem>>, vector<6x512xf32>
    tpu.vector_store %arg8[%c0_9, %c0_10], %14 {strides = array<i32>} : memref<152x512xf32, #tpu.memory_space<vmem>>, vector<6x512xf32>,
    %c16_i32 = arith.constant 16 : i32
    %16 = tpu.dynamic_rotate %11 by %c16_i32 dim 1 : vector<6x512xf32>, i32 -> vector<6x512xf32>
    %17 = vector.broadcast %0 : vector<1x512xf32> to vector<6x512xf32>
    %18 = arith.mulf %16, %17 : vector<6x512xf32>
    %c8 = arith.constant 8 : index
    %c0_11 = arith.constant 0 : index
    %19 = vector.load %arg8[%c8, %c0_11] : memref<152x512xf32, #tpu.memory_space<vmem>>, vector<6x512xf32>
    tpu.vector_store %arg8[%c8, %c0_11], %18 {strides = array<i32>} : memref<152x512xf32, #tpu.memory_space<vmem>>, vector<6x512xf32>,
    %c15_i32 = arith.constant 15 : i32
    %20 = tpu.dynamic_rotate %11 by %c15_i32 dim 1 : vector<6x512xf32>, i32 -> vector<6x512xf32>
    %21 = vector.broadcast %5 : vector<1x512xf32> to vector<6x512xf32>
    %22 = arith.mulf %20, %21 : vector<6x512xf32>
    %c16 = arith.constant 16 : index
    %c0_12 = arith.constant 0 : index
    %23 = vector.load %arg8[%c16, %c0_12] : memref<152x512xf32, #tpu.memory_space<vmem>>, vector<6x512xf32>
    tpu.vector_store %arg8[%c16, %c0_12], %22 {strides = array<i32>} : memref<152x512xf32, #tpu.memory_space<vmem>>, vector<6x512xf32>,
    %c1_i32 = arith.constant 1 : i32
    %24 = tpu.dynamic_rotate %11 by %c1_i32 dim 1 : vector<6x512xf32>, i32 -> vector<6x512xf32>
    %25 = vector.broadcast %2 : vector<1x512xf32> to vector<6x512xf32>
    %26 = arith.mulf %24, %25 : vector<6x512xf32>
    %c24 = arith.constant 24 : index
    %c0_13 = arith.constant 0 : index
    %27 = vector.load %arg8[%c24, %c0_13] : memref<152x512xf32, #tpu.memory_space<vmem>>, vector<6x512xf32>
    tpu.vector_store %arg8[%c24, %c0_13], %26 {strides = array<i32>} : memref<152x512xf32, #tpu.memory_space<vmem>>, vector<6x512xf32>,
    %c32 = arith.constant 32 : index
    %c0_14 = arith.constant 0 : index
    %28 = vector.load %arg8[%c32, %c0_14] : memref<152x512xf32, #tpu.memory_space<vmem>>, vector<6x512xf32>
    tpu.vector_store %arg8[%c32, %c0_14], %11 {strides = array<i32>} : memref<152x512xf32, #tpu.memory_space<vmem>>, vector<6x512xf32>,
    %c511_i32 = arith.constant 511 : i32
    %29 = tpu.dynamic_rotate %11 by %c511_i32 dim 1 : vector<6x512xf32>, i32 -> vector<6x512xf32>
    %30 = vector.broadcast %3 : vector<1x512xf32> to vector<6x512xf32>
    %31 = arith.mulf %29, %30 : vector<6x512xf32>
    %c40 = arith.constant 40 : index
    %c0_15 = arith.constant 0 : index
    %32 = vector.load %arg8[%c40, %c0_15] : memref<152x512xf32, #tpu.memory_space<vmem>>, vector<6x512xf32>
    tpu.vector_store %arg8[%c40, %c0_15], %31 {strides = array<i32>} : memref<152x512xf32, #tpu.memory_space<vmem>>, vector<6x512xf32>,
    %c497_i32 = arith.constant 497 : i32
    %33 = tpu.dynamic_rotate %11 by %c497_i32 dim 1 : vector<6x512xf32>, i32 -> vector<6x512xf32>
    %34 = vector.broadcast %6 : vector<1x512xf32> to vector<6x512xf32>
    %35 = arith.mulf %33, %34 : vector<6x512xf32>
    %c48 = arith.constant 48 : index
    %c0_16 = arith.constant 0 : index
    %36 = vector.load %arg8[%c48, %c0_16] : memref<152x512xf32, #tpu.memory_space<vmem>>, vector<6x512xf32>
    tpu.vector_store %arg8[%c48, %c0_16], %35 {strides = array<i32>} : memref<152x512xf32, #tpu.memory_space<vmem>>, vector<6x512xf32>,
    %c496_i32 = arith.constant 496 : i32
    %37 = tpu.dynamic_rotate %11 by %c496_i32 dim 1 : vector<6x512xf32>, i32 -> vector<6x512xf32>
    %38 = vector.broadcast %1 : vector<1x512xf32> to vector<6x512xf32>
    %39 = arith.mulf %37, %38 : vector<6x512xf32>
    %c56 = arith.constant 56 : index
    %c0_17 = arith.constant 0 : index
    %40 = vector.load %arg8[%c56, %c0_17] : memref<152x512xf32, #tpu.memory_space<vmem>>, vector<6x512xf32>
    tpu.vector_store %arg8[%c56, %c0_17], %39 {strides = array<i32>} : memref<152x512xf32, #tpu.memory_space<vmem>>, vector<6x512xf32>,
    %c495_i32 = arith.constant 495 : i32
    %41 = tpu.dynamic_rotate %11 by %c495_i32 dim 1 : vector<6x512xf32>, i32 -> vector<6x512xf32>
    %42 = vector.broadcast %7 : vector<1x512xf32> to vector<6x512xf32>
    %43 = arith.mulf %41, %42 : vector<6x512xf32>
    %c64 = arith.constant 64 : index
    %c0_18 = arith.constant 0 : index
    %44 = vector.load %arg8[%c64, %c0_18] : memref<152x512xf32, #tpu.memory_space<vmem>>, vector<6x512xf32>
    tpu.vector_store %arg8[%c64, %c0_18], %43 {strides = array<i32>} : memref<152x512xf32, #tpu.memory_space<vmem>>, vector<6x512xf32>,
    %c72 = arith.constant 72 : index
    %c0_19 = arith.constant 0 : index
    %45 = vector.load %arg8[%c72, %c0_19] : memref<152x512xf32, #tpu.memory_space<vmem>>, vector<1x512xf32>
    tpu.vector_store %arg8[%c72, %c0_19], %8 {strides = array<i32>} : memref<152x512xf32, #tpu.memory_space<vmem>>, vector<1x512xf32>,
    %c0_20 = arith.constant 0 : index
    %c0_21 = arith.constant 0 : index
    %46 = vector.load %arg2[%c0_20, %c0_21] : memref<16x73xf32, #tpu.memory_space<vmem>>, vector<16x73xf32>
    %c0_22 = arith.constant 0 : index
    %c0_23 = arith.constant 0 : index
    %47 = vector.load %arg8[%c0_22, %c0_23] : memref<152x512xf32, #tpu.memory_space<vmem>>, vector<73x512xf32>
    %cst_24 = arith.constant dense<0.000000e+00> : vector<16x512xf32>
    %48 = tpu.matmul %46, %47, %cst_24 {dimension_numbers = #tpu.dot_dimension_numbers<[1], [0], [0], [1], [0, 0, 1, 1], [], []>} : vector<16x73xf32>, vector<73x512xf32>, vector<16x512xf32> -> vector<16x512xf32>
    %cst_25 = arith.constant 0.000000e+00 : f32
    %49 = vector.broadcast %cst_25 : f32 to vector<16x512xf32>
    %50 = arith.maximumf %48, %49 : vector<16x512xf32>
    %c17_i32_26 = arith.constant 17 : i32
    %51 = tpu.dynamic_rotate %50 by %c17_i32_26 dim 1 : vector<16x512xf32>, i32 -> vector<16x512xf32>
    %52 = vector.broadcast %4 : vector<1x512xf32> to vector<16x512xf32>
    %53 = arith.mulf %51, %52 : vector<16x512xf32>
    %c0_27 = arith.constant 0 : index
    %c0_28 = arith.constant 0 : index
    %54 = vector.load %arg8[%c0_27, %c0_28] : memref<152x512xf32, #tpu.memory_space<vmem>>, vector<16x512xf32>
    tpu.vector_store %arg8[%c0_27, %c0_28], %53 {strides = array<i32>} : memref<152x512xf32, #tpu.memory_space<vmem>>, vector<16x512xf32>,
    %c16_i32_29 = arith.constant 16 : i32
    %55 = tpu.dynamic_rotate %50 by %c16_i32_29 dim 1 : vector<16x512xf32>, i32 -> vector<16x512xf32>
    %56 = vector.broadcast %0 : vector<1x512xf32> to vector<16x512xf32>
    %57 = arith.mulf %55, %56 : vector<16x512xf32>
    %c16_30 = arith.constant 16 : index
    %c0_31 = arith.constant 0 : index
    %58 = vector.load %arg8[%c16_30, %c0_31] : memref<152x512xf32, #tpu.memory_space<vmem>>, vector<16x512xf32>
    tpu.vector_store %arg8[%c16_30, %c0_31], %57 {strides = array<i32>} : memref<152x512xf32, #tpu.memory_space<vmem>>, vector<16x512xf32>,
    %c15_i32_32 = arith.constant 15 : i32
    %59 = tpu.dynamic_rotate %50 by %c15_i32_32 dim 1 : vector<16x512xf32>, i32 -> vector<16x512xf32>
    %60 = vector.broadcast %5 : vector<1x512xf32> to vector<16x512xf32>
    %61 = arith.mulf %59, %60 : vector<16x512xf32>
    %c32_33 = arith.constant 32 : index
    %c0_34 = arith.constant 0 : index
    %62 = vector.load %arg8[%c32_33, %c0_34] : memref<152x512xf32, #tpu.memory_space<vmem>>, vector<16x512xf32>
    tpu.vector_store %arg8[%c32_33, %c0_34], %61 {strides = array<i32>} : memref<152x512xf32, #tpu.memory_space<vmem>>, vector<16x512xf32>,
    %c1_i32_35 = arith.constant 1 : i32
    %63 = tpu.dynamic_rotate %50 by %c1_i32_35 dim 1 : vector<16x512xf32>, i32 -> vector<16x512xf32>
    %64 = vector.broadcast %2 : vector<1x512xf32> to vector<16x512xf32>
    %65 = arith.mulf %63, %64 : vector<16x512xf32>
    %c48_36 = arith.constant 48 : index
    %c0_37 = arith.constant 0 : index
    %66 = vector.load %arg8[%c48_36, %c0_37] : memref<152x512xf32, #tpu.memory_space<vmem>>, vector<16x512xf32>
    tpu.vector_store %arg8[%c48_36, %c0_37], %65 {strides = array<i32>} : memref<152x512xf32, #tpu.memory_space<vmem>>, vector<16x512xf32>,
    %c64_38 = arith.constant 64 : index
    %c0_39 = arith.constant 0 : index
    %67 = vector.load %arg8[%c64_38, %c0_39] : memref<152x512xf32, #tpu.memory_space<vmem>>, vector<16x512xf32>
    tpu.vector_store %arg8[%c64_38, %c0_39], %50 {strides = array<i32>} : memref<152x512xf32, #tpu.memory_space<vmem>>, vector<16x512xf32>,
    %c511_i32_40 = arith.constant 511 : i32
    %68 = tpu.dynamic_rotate %50 by %c511_i32_40 dim 1 : vector<16x512xf32>, i32 -> vector<16x512xf32>
    %69 = vector.broadcast %3 : vector<1x512xf32> to vector<16x512xf32>
    %70 = arith.mulf %68, %69 : vector<16x512xf32>
    %c80 = arith.constant 80 : index
    %c0_41 = arith.constant 0 : index
    %71 = vector.load %arg8[%c80, %c0_41] : memref<152x512xf32, #tpu.memory_space<vmem>>, vector<16x512xf32>
    tpu.vector_store %arg8[%c80, %c0_41], %70 {strides = array<i32>} : memref<152x512xf32, #tpu.memory_space<vmem>>, vector<16x512xf32>,
    %c497_i32_42 = arith.constant 497 : i32
    %72 = tpu.dynamic_rotate %50 by %c497_i32_42 dim 1 : vector<16x512xf32>, i32 -> vector<16x512xf32>
    %73 = vector.broadcast %6 : vector<1x512xf32> to vector<16x512xf32>
    %74 = arith.mulf %72, %73 : vector<16x512xf32>
    %c96 = arith.constant 96 : index
    %c0_43 = arith.constant 0 : index
    %75 = vector.load %arg8[%c96, %c0_43] : memref<152x512xf32, #tpu.memory_space<vmem>>, vector<16x512xf32>
    tpu.vector_store %arg8[%c96, %c0_43], %74 {strides = array<i32>} : memref<152x512xf32, #tpu.memory_space<vmem>>, vector<16x512xf32>,
    %c496_i32_44 = arith.constant 496 : i32
    %76 = tpu.dynamic_rotate %50 by %c496_i32_44 dim 1 : vector<16x512xf32>, i32 -> vector<16x512xf32>
    %77 = vector.broadcast %1 : vector<1x512xf32> to vector<16x512xf32>
    %78 = arith.mulf %76, %77 : vector<16x512xf32>
    %c112 = arith.constant 112 : index
    %c0_45 = arith.constant 0 : index
    %79 = vector.load %arg8[%c112, %c0_45] : memref<152x512xf32, #tpu.memory_space<vmem>>, vector<16x512xf32>
    tpu.vector_store %arg8[%c112, %c0_45], %78 {strides = array<i32>} : memref<152x512xf32, #tpu.memory_space<vmem>>, vector<16x512xf32>,
    %c495_i32_46 = arith.constant 495 : i32
    %80 = tpu.dynamic_rotate %50 by %c495_i32_46 dim 1 : vector<16x512xf32>, i32 -> vector<16x512xf32>
    %81 = vector.broadcast %7 : vector<1x512xf32> to vector<16x512xf32>
    %82 = arith.mulf %80, %81 : vector<16x512xf32>
    %c128 = arith.constant 128 : index
    %c0_47 = arith.constant 0 : index
    %83 = vector.load %arg8[%c128, %c0_47] : memref<152x512xf32, #tpu.memory_space<vmem>>, vector<16x512xf32>
    tpu.vector_store %arg8[%c128, %c0_47], %82 {strides = array<i32>} : memref<152x512xf32, #tpu.memory_space<vmem>>, vector<16x512xf32>,
    %c144 = arith.constant 144 : index
    %c0_48 = arith.constant 0 : index
    %84 = vector.load %arg8[%c144, %c0_48] : memref<152x512xf32, #tpu.memory_space<vmem>>, vector<1x512xf32>
    tpu.vector_store %arg8[%c144, %c0_48], %8 {strides = array<i32>} : memref<152x512xf32, #tpu.memory_space<vmem>>, vector<1x512xf32>,
    %c0_49 = arith.constant 0 : index
    %c0_50 = arith.constant 0 : index
    %85 = vector.load %arg3[%c0_49, %c0_50] : memref<6x145xf32, #tpu.memory_space<vmem>>, vector<6x145xf32>
    %c0_51 = arith.constant 0 : index
    %c0_52 = arith.constant 0 : index
    %86 = vector.load %arg8[%c0_51, %c0_52] : memref<152x512xf32, #tpu.memory_space<vmem>>, vector<145x512xf32>
    %cst_53 = arith.constant dense<0.000000e+00> : vector<6x512xf32>
    %87 = tpu.matmul %85, %86, %cst_53 {dimension_numbers = #tpu.dot_dimension_numbers<[1], [0], [0], [1], [0, 0, 1, 1], [], []>} : vector<6x145xf32>, vector<145x512xf32>, vector<6x512xf32> -> vector<6x512xf32>
    %88 = math.tanh %87 : vector<6x512xf32>
    %c0_54 = arith.constant 0 : index
    %c0_55 = arith.constant 0 : index
    %89 = vector.load %arg6[%c0_54, %c0_55] : memref<6x512xf32, #tpu.memory_space<vmem>>, vector<6x512xf32>
    tpu.vector_store %arg6[%c0_54, %c0_55], %88 {strides = array<i32>} : memref<6x512xf32, #tpu.memory_space<vmem>>, vector<6x512xf32>,
    %c17_i32_56 = arith.constant 17 : i32
    %90 = tpu.dynamic_rotate %88 by %c17_i32_56 dim 1 : vector<6x512xf32>, i32 -> vector<6x512xf32>
    %91 = vector.broadcast %4 : vector<1x512xf32> to vector<6x512xf32>
    %92 = arith.mulf %90, %91 : vector<6x512xf32>
    %c0_57 = arith.constant 0 : index
    %c0_58 = arith.constant 0 : index
    %93 = vector.load %arg8[%c0_57, %c0_58] : memref<152x512xf32, #tpu.memory_space<vmem>>, vector<6x512xf32>
    tpu.vector_store %arg8[%c0_57, %c0_58], %92 {strides = array<i32>} : memref<152x512xf32, #tpu.memory_space<vmem>>, vector<6x512xf32>,
    %c16_i32_59 = arith.constant 16 : i32
    %94 = tpu.dynamic_rotate %88 by %c16_i32_59 dim 1 : vector<6x512xf32>, i32 -> vector<6x512xf32>
    %95 = vector.broadcast %0 : vector<1x512xf32> to vector<6x512xf32>
    %96 = arith.mulf %94, %95 : vector<6x512xf32>
    %c8_60 = arith.constant 8 : index
    %c0_61 = arith.constant 0 : index
    %97 = vector.load %arg8[%c8_60, %c0_61] : memref<152x512xf32, #tpu.memory_space<vmem>>, vector<6x512xf32>
    tpu.vector_store %arg8[%c8_60, %c0_61], %96 {strides = array<i32>} : memref<152x512xf32, #tpu.memory_space<vmem>>, vector<6x512xf32>,
    %c15_i32_62 = arith.constant 15 : i32
    %98 = tpu.dynamic_rotate %88 by %c15_i32_62 dim 1 : vector<6x512xf32>, i32 -> vector<6x512xf32>
    %99 = vector.broadcast %5 : vector<1x512xf32> to vector<6x512xf32>
    %100 = arith.mulf %98, %99 : vector<6x512xf32>
    %c16_63 = arith.constant 16 : index
    %c0_64 = arith.constant 0 : index
    %101 = vector.load %arg8[%c16_63, %c0_64] : memref<152x512xf32, #tpu.memory_space<vmem>>, vector<6x512xf32>
    tpu.vector_store %arg8[%c16_63, %c0_64], %100 {strides = array<i32>} : memref<152x512xf32, #tpu.memory_space<vmem>>, vector<6x512xf32>,
    %c1_i32_65 = arith.constant 1 : i32
    %102 = tpu.dynamic_rotate %88 by %c1_i32_65 dim 1 : vector<6x512xf32>, i32 -> vector<6x512xf32>
    %103 = vector.broadcast %2 : vector<1x512xf32> to vector<6x512xf32>
    %104 = arith.mulf %102, %103 : vector<6x512xf32>
    %c24_66 = arith.constant 24 : index
    %c0_67 = arith.constant 0 : index
    %105 = vector.load %arg8[%c24_66, %c0_67] : memref<152x512xf32, #tpu.memory_space<vmem>>, vector<6x512xf32>
    tpu.vector_store %arg8[%c24_66, %c0_67], %104 {strides = array<i32>} : memref<152x512xf32, #tpu.memory_space<vmem>>, vector<6x512xf32>,
    %c32_68 = arith.constant 32 : index
    %c0_69 = arith.constant 0 : index
    %106 = vector.load %arg8[%c32_68, %c0_69] : memref<152x512xf32, #tpu.memory_space<vmem>>, vector<6x512xf32>
    tpu.vector_store %arg8[%c32_68, %c0_69], %88 {strides = array<i32>} : memref<152x512xf32, #tpu.memory_space<vmem>>, vector<6x512xf32>,
    %c511_i32_70 = arith.constant 511 : i32
    %107 = tpu.dynamic_rotate %88 by %c511_i32_70 dim 1 : vector<6x512xf32>, i32 -> vector<6x512xf32>
    %108 = vector.broadcast %3 : vector<1x512xf32> to vector<6x512xf32>
    %109 = arith.mulf %107, %108 : vector<6x512xf32>
    %c40_71 = arith.constant 40 : index
    %c0_72 = arith.constant 0 : index
    %110 = vector.load %arg8[%c40_71, %c0_72] : memref<152x512xf32, #tpu.memory_space<vmem>>, vector<6x512xf32>
    tpu.vector_store %arg8[%c40_71, %c0_72], %109 {strides = array<i32>} : memref<152x512xf32, #tpu.memory_space<vmem>>, vector<6x512xf32>,
    %c497_i32_73 = arith.constant 497 : i32
    %111 = tpu.dynamic_rotate %88 by %c497_i32_73 dim 1 : vector<6x512xf32>, i32 -> vector<6x512xf32>
    %112 = vector.broadcast %6 : vector<1x512xf32> to vector<6x512xf32>
    %113 = arith.mulf %111, %112 : vector<6x512xf32>
    %c48_74 = arith.constant 48 : index
    %c0_75 = arith.constant 0 : index
    %114 = vector.load %arg8[%c48_74, %c0_75] : memref<152x512xf32, #tpu.memory_space<vmem>>, vector<6x512xf32>
    tpu.vector_store %arg8[%c48_74, %c0_75], %113 {strides = array<i32>} : memref<152x512xf32, #tpu.memory_space<vmem>>, vector<6x512xf32>,
    %c496_i32_76 = arith.constant 496 : i32
    %115 = tpu.dynamic_rotate %88 by %c496_i32_76 dim 1 : vector<6x512xf32>, i32 -> vector<6x512xf32>
    %116 = vector.broadcast %1 : vector<1x512xf32> to vector<6x512xf32>
    %117 = arith.mulf %115, %116 : vector<6x512xf32>
    %c56_77 = arith.constant 56 : index
    %c0_78 = arith.constant 0 : index
    %118 = vector.load %arg8[%c56_77, %c0_78] : memref<152x512xf32, #tpu.memory_space<vmem>>, vector<6x512xf32>
    tpu.vector_store %arg8[%c56_77, %c0_78], %117 {strides = array<i32>} : memref<152x512xf32, #tpu.memory_space<vmem>>, vector<6x512xf32>,
    %c495_i32_79 = arith.constant 495 : i32
    %119 = tpu.dynamic_rotate %88 by %c495_i32_79 dim 1 : vector<6x512xf32>, i32 -> vector<6x512xf32>
    %120 = vector.broadcast %7 : vector<1x512xf32> to vector<6x512xf32>
    %121 = arith.mulf %119, %120 : vector<6x512xf32>
    %c64_80 = arith.constant 64 : index
    %c0_81 = arith.constant 0 : index
    %122 = vector.load %arg8[%c64_80, %c0_81] : memref<152x512xf32, #tpu.memory_space<vmem>>, vector<6x512xf32>
    tpu.vector_store %arg8[%c64_80, %c0_81], %121 {strides = array<i32>} : memref<152x512xf32, #tpu.memory_space<vmem>>, vector<6x512xf32>,
    %c72_82 = arith.constant 72 : index
    %c0_83 = arith.constant 0 : index
    %123 = vector.load %arg8[%c72_82, %c0_83] : memref<152x512xf32, #tpu.memory_space<vmem>>, vector<1x512xf32>
    tpu.vector_store %arg8[%c72_82, %c0_83], %8 {strides = array<i32>} : memref<152x512xf32, #tpu.memory_space<vmem>>, vector<1x512xf32>,
    %c0_84 = arith.constant 0 : index
    %c0_85 = arith.constant 0 : index
    %124 = vector.load %arg4[%c0_84, %c0_85] : memref<16x73xf32, #tpu.memory_space<vmem>>, vector<16x73xf32>
    %c0_86 = arith.constant 0 : index
    %c0_87 = arith.constant 0 : index
    %125 = vector.load %arg8[%c0_86, %c0_87] : memref<152x512xf32, #tpu.memory_space<vmem>>, vector<73x512xf32>
    %cst_88 = arith.constant dense<0.000000e+00> : vector<16x512xf32>
    %126 = tpu.matmul %124, %125, %cst_88 {dimension_numbers = #tpu.dot_dimension_numbers<[1], [0], [0], [1], [0, 0, 1, 1], [], []>} : vector<16x73xf32>, vector<73x512xf32>, vector<16x512xf32> -> vector<16x512xf32>
    %cst_89 = arith.constant 0.000000e+00 : f32
    %127 = vector.broadcast %cst_89 : f32 to vector<16x512xf32>
    %128 = arith.maximumf %126, %127 : vector<16x512xf32>
    %c17_i32_90 = arith.constant 17 : i32
    %129 = tpu.dynamic_rotate %128 by %c17_i32_90 dim 1 : vector<16x512xf32>, i32 -> vector<16x512xf32>
    %130 = vector.broadcast %4 : vector<1x512xf32> to vector<16x512xf32>
    %131 = arith.mulf %129, %130 : vector<16x512xf32>
    %c0_91 = arith.constant 0 : index
    %c0_92 = arith.constant 0 : index
    %132 = vector.load %arg8[%c0_91, %c0_92] : memref<152x512xf32, #tpu.memory_space<vmem>>, vector<16x512xf32>
    tpu.vector_store %arg8[%c0_91, %c0_92], %131 {strides = array<i32>} : memref<152x512xf32, #tpu.memory_space<vmem>>, vector<16x512xf32>,
    %c16_i32_93 = arith.constant 16 : i32
    %133 = tpu.dynamic_rotate %128 by %c16_i32_93 dim 1 : vector<16x512xf32>, i32 -> vector<16x512xf32>
    %134 = vector.broadcast %0 : vector<1x512xf32> to vector<16x512xf32>
    %135 = arith.mulf %133, %134 : vector<16x512xf32>
    %c16_94 = arith.constant 16 : index
    %c0_95 = arith.constant 0 : index
    %136 = vector.load %arg8[%c16_94, %c0_95] : memref<152x512xf32, #tpu.memory_space<vmem>>, vector<16x512xf32>
    tpu.vector_store %arg8[%c16_94, %c0_95], %135 {strides = array<i32>} : memref<152x512xf32, #tpu.memory_space<vmem>>, vector<16x512xf32>,
    %c15_i32_96 = arith.constant 15 : i32
    %137 = tpu.dynamic_rotate %128 by %c15_i32_96 dim 1 : vector<16x512xf32>, i32 -> vector<16x512xf32>
    %138 = vector.broadcast %5 : vector<1x512xf32> to vector<16x512xf32>
    %139 = arith.mulf %137, %138 : vector<16x512xf32>
    %c32_97 = arith.constant 32 : index
    %c0_98 = arith.constant 0 : index
    %140 = vector.load %arg8[%c32_97, %c0_98] : memref<152x512xf32, #tpu.memory_space<vmem>>, vector<16x512xf32>
    tpu.vector_store %arg8[%c32_97, %c0_98], %139 {strides = array<i32>} : memref<152x512xf32, #tpu.memory_space<vmem>>, vector<16x512xf32>,
    %c1_i32_99 = arith.constant 1 : i32
    %141 = tpu.dynamic_rotate %128 by %c1_i32_99 dim 1 : vector<16x512xf32>, i32 -> vector<16x512xf32>
    %142 = vector.broadcast %2 : vector<1x512xf32> to vector<16x512xf32>
    %143 = arith.mulf %141, %142 : vector<16x512xf32>
    %c48_100 = arith.constant 48 : index
    %c0_101 = arith.constant 0 : index
    %144 = vector.load %arg8[%c48_100, %c0_101] : memref<152x512xf32, #tpu.memory_space<vmem>>, vector<16x512xf32>
    tpu.vector_store %arg8[%c48_100, %c0_101], %143 {strides = array<i32>} : memref<152x512xf32, #tpu.memory_space<vmem>>, vector<16x512xf32>,
    %c64_102 = arith.constant 64 : index
    %c0_103 = arith.constant 0 : index
    %145 = vector.load %arg8[%c64_102, %c0_103] : memref<152x512xf32, #tpu.memory_space<vmem>>, vector<16x512xf32>
    tpu.vector_store %arg8[%c64_102, %c0_103], %128 {strides = array<i32>} : memref<152x512xf32, #tpu.memory_space<vmem>>, vector<16x512xf32>,
    %c511_i32_104 = arith.constant 511 : i32
    %146 = tpu.dynamic_rotate %128 by %c511_i32_104 dim 1 : vector<16x512xf32>, i32 -> vector<16x512xf32>
    %147 = vector.broadcast %3 : vector<1x512xf32> to vector<16x512xf32>
    %148 = arith.mulf %146, %147 : vector<16x512xf32>
    %c80_105 = arith.constant 80 : index
    %c0_106 = arith.constant 0 : index
    %149 = vector.load %arg8[%c80_105, %c0_106] : memref<152x512xf32, #tpu.memory_space<vmem>>, vector<16x512xf32>
    tpu.vector_store %arg8[%c80_105, %c0_106], %148 {strides = array<i32>} : memref<152x512xf32, #tpu.memory_space<vmem>>, vector<16x512xf32>,
    %c497_i32_107 = arith.constant 497 : i32
    %150 = tpu.dynamic_rotate %128 by %c497_i32_107 dim 1 : vector<16x512xf32>, i32 -> vector<16x512xf32>
    %151 = vector.broadcast %6 : vector<1x512xf32> to vector<16x512xf32>
    %152 = arith.mulf %150, %151 : vector<16x512xf32>
    %c96_108 = arith.constant 96 : index
    %c0_109 = arith.constant 0 : index
    %153 = vector.load %arg8[%c96_108, %c0_109] : memref<152x512xf32, #tpu.memory_space<vmem>>, vector<16x512xf32>
    tpu.vector_store %arg8[%c96_108, %c0_109], %152 {strides = array<i32>} : memref<152x512xf32, #tpu.memory_space<vmem>>, vector<16x512xf32>,
    %c496_i32_110 = arith.constant 496 : i32
    %154 = tpu.dynamic_rotate %128 by %c496_i32_110 dim 1 : vector<16x512xf32>, i32 -> vector<16x512xf32>
    %155 = vector.broadcast %1 : vector<1x512xf32> to vector<16x512xf32>
    %156 = arith.mulf %154, %155 : vector<16x512xf32>
    %c112_111 = arith.constant 112 : index
    %c0_112 = arith.constant 0 : index
    %157 = vector.load %arg8[%c112_111, %c0_112] : memref<152x512xf32, #tpu.memory_space<vmem>>, vector<16x512xf32>
    tpu.vector_store %arg8[%c112_111, %c0_112], %156 {strides = array<i32>} : memref<152x512xf32, #tpu.memory_space<vmem>>, vector<16x512xf32>,
    %c495_i32_113 = arith.constant 495 : i32
    %158 = tpu.dynamic_rotate %128 by %c495_i32_113 dim 1 : vector<16x512xf32>, i32 -> vector<16x512xf32>
    %159 = vector.broadcast %7 : vector<1x512xf32> to vector<16x512xf32>
    %160 = arith.mulf %158, %159 : vector<16x512xf32>
    %c128_114 = arith.constant 128 : index
    %c0_115 = arith.constant 0 : index
    %161 = vector.load %arg8[%c128_114, %c0_115] : memref<152x512xf32, #tpu.memory_space<vmem>>, vector<16x512xf32>
    tpu.vector_store %arg8[%c128_114, %c0_115], %160 {strides = array<i32>} : memref<152x512xf32, #tpu.memory_space<vmem>>, vector<16x512xf32>,
    %c144_116 = arith.constant 144 : index
    %c0_117 = arith.constant 0 : index
    %162 = vector.load %arg8[%c144_116, %c0_117] : memref<152x512xf32, #tpu.memory_space<vmem>>, vector<1x512xf32>
    tpu.vector_store %arg8[%c144_116, %c0_117], %8 {strides = array<i32>} : memref<152x512xf32, #tpu.memory_space<vmem>>, vector<1x512xf32>,
    %c0_118 = arith.constant 0 : index
    %c0_119 = arith.constant 0 : index
    %163 = vector.load %arg5[%c0_118, %c0_119] : memref<6x145xf32, #tpu.memory_space<vmem>>, vector<6x145xf32>
    %c0_120 = arith.constant 0 : index
    %c0_121 = arith.constant 0 : index
    %164 = vector.load %arg8[%c0_120, %c0_121] : memref<152x512xf32, #tpu.memory_space<vmem>>, vector<145x512xf32>
    %cst_122 = arith.constant dense<0.000000e+00> : vector<6x512xf32>
    %165 = tpu.matmul %163, %164, %cst_122 {dimension_numbers = #tpu.dot_dimension_numbers<[1], [0], [0], [1], [0, 0, 1, 1], [], []>} : vector<6x145xf32>, vector<145x512xf32>, vector<6x512xf32> -> vector<6x512xf32>
    %166 = math.tanh %165 : vector<6x512xf32>
    %c0_123 = arith.constant 0 : index
    %c0_124 = arith.constant 0 : index
    %167 = vector.load %arg7[%c0_123, %c0_124] : memref<6x512xf32, #tpu.memory_space<vmem>>, vector<6x512xf32>
    tpu.vector_store %arg7[%c0_123, %c0_124], %166 {strides = array<i32>} : memref<6x512xf32, #tpu.memory_space<vmem>>, vector<6x512xf32>,
    return
  }
}

</mosaic_0001>

<bundles_post_ra>
// kernel: cyclegan_forward.1
= control target key start
LH: loop header
LB: loop body
LE: loop exit
PB: predicated region body
PF: predicated region fallthrough
CT: control target
= control target key end

     0   :  { %v4170_v3 = vmov 0.0   ;;  %s2524_s30 = smov 17   ;;  %s2525_s10 = smov 16   ;;  %v124_v5 = vlaneseq  ;;  %v2530_v7 = vmov 1.0   ;;  %vm514_vm9 = vcmask 1040384   ;;  %s4162_s1 = inlined_call_operand.vmem [shape: f32[6,512], index: 1, kind: input, shape index: {}]   ;;  %s4163_s0 = inlined_call_operand.vmem [shape: f32[4,512], index: 0, kind: input, shape index: {}]   ;;  %s4164_s2 = inlined_call_operand.vmem [shape: f32[16,73], index: 2, kind: input, shape index: {}]   ;;  %s4165_s3 = inlined_call_operand.vmem [shape: f32[6,145], index: 3, kind: input, shape index: {}]   ;;  %s4166_s6 = inlined_call_operand.vmem [shape: f32[6,512], index: 6, kind: output, shape index: {0}]   ;;  %s4167_s4 = inlined_call_operand.vmem [shape: f32[16,73], index: 4, kind: input, shape index: {}]   ;;  %s4168_s5 = inlined_call_operand.vmem [shape: f32[6,145], index: 5, kind: input, shape index: {}]   ;;  %s4169_s7 = inlined_call_operand.vmem [shape: f32[6,512], index: 7, kind: output, shape index: {1}]  }
   0x1   :  { %v2577_v0 = vld [vmem:[%s4162_s1 + $0x10] sm:$0x3f]  ;;  %v2582_v1 = vld [vmem:[%s4162_s1] sm:$0x3f]  ;;  %v2587_v2 = vld [vmem:[%s4162_s1 + $0x18] sm:$0x3f]  ;;  %591 = vmatprep.mubr.f32.mxu0 %v4170_v3  ;;  %668 = vmatprep.mubr.f32.mxu1 %v4170_v3 }
   0x2   :  { %36 = vst [vmem:[#allocation2] sm:$0xff] %v4170_v3  ;;  %39 = vst [vmem:[#allocation2 + $0x18] sm:$0xff] %v4170_v3  ;;  %120 = vrot.lane.b32.xlu1 %v2577_v0, %s2524_s30  ;;  %116 = vrot.lane.b32.xlu0 %v2582_v1, %s2524_s30  ;;  %v113_v4 = vld [vmem:[%s4162_s1 + $0x8] sm:$0x3f]  ;;  %s2526_s1 = smov 15   ;;  %s2527_s11 = smov 1  }
   0x3   :  { %37 = vst [vmem:[#allocation2 + $0x8] sm:$0xff] %v4170_v3  ;;  %38 = vst [vmem:[#allocation2 + $0x10] sm:$0xff] %v4170_v3  ;;  %s2528_s12 = smov 127   ;;  %s2529_s13 = smov 113   ;;  %vm2683_vm0 = vcmp.lt.s32.totalorder %v124_v5, 512  ;;  %v133_v8 = vshrl.u32 %v124_v5, 7 }
   0x4   :  { %40 = vst [vmem:[#allocation2 + $0x20] sm:$0xff] %v4170_v3  ;;  %41 = vst [vmem:[#allocation2 + $0x28] sm:$0xff] %v4170_v3  ;;  %s2531_s14 = smov 112   ;;  %s2532_s15 = smov 111   ;;  %v2715_v11 = vand.u32 127, %v124_v5  ;;  %vm2533_vm10 = vmmov 1  }
   0x5   :  { %42 = vst [vmem:[#allocation2 + $0x30] sm:$0xff] %v4170_v3  ;;  %43 = vst [vmem:[#allocation2 + $0x38] sm:$0xff] %v4170_v3  ;;  %v25_v9 = vld [vmem:[%s4163_s0] ss:$4 sm:$0xf]  ;;  %v2717_v12 = vsub.s32 0, %v133_v8 }
   0x6   :  { %44 = vst [vmem:[#allocation2 + $0x40] sm:$0xff] %v4170_v3  ;;  %45 = vst [vmem:[#allocation2 + $0x48] sm:$0xff] %v4170_v3  ;;  %122 = vrot.lane.b32.xlu1 %v2587_v2, %s2524_s30  ;;  %118 = vrot.lane.b32.xlu0 %v113_v4, %s2524_s30  ;;  %v2713_v10 = vld [vmem:[%s4163_s0 + $0x2] ss:$4 sm:$0xf]  ;;  %v2719_v13 = vsub.s32 3, %v133_v8 }
   0x7   :  { %46 = vst [vmem:[#allocation2 + $0x50] sm:$0xff] %v4170_v3  ;;  %47 = vst [vmem:[#allocation2 + $0x58] sm:$0xff] %v4170_v3  ;;  %v32_v14 = vmul.f32 %v2713_v10, %v25_v9  ;;  %v2722_v15 = vsub.s32 1, %v133_v8  ;;  %v2724_v16 = vsub.s32 2, %v133_v8  ;;  %vm126_vm1 = vcmp.lt.s32.totalorder %v2715_v11, 17 }
   0x8   :  { %48 = vst [vmem:[#allocation2 + $0x60] sm:$0xff] %v4170_v3  ;;  %49 = vst [vmem:[#allocation2 + $0x68] sm:$0xff] %v4170_v3  ;;  %vm168_vm2 = vcmp.lt.s32.totalorder %v2715_v11, 16  ;;  %v2758_v34 = vld [vmem:[%s4163_s0 + $0x3] ss:$4 sm:$0xf]  ;;  %v2763_v38 = vrot.slane %v25_v9, %v2717_v12  ;;  %v2770_v41 = vrot.slane %v25_v9, %v2719_v13 }
   0x9   :  { %50 = vst [vmem:[#allocation2 + $0x70] sm:$0xff] %v4170_v3  ;;  %51 = vst [vmem:[#allocation2 + $0x78] sm:$0xff] %v4170_v3  ;;  %v2728_v19 = vrot.slane %v32_v14, %v2717_v12  ;;  %v2731_v20 = vrot.slane %v32_v14, %v2719_v13  ;;  %v2734_v21 = vrot.slane %v32_v14, %v2722_v15  ;;  %vm210_vm3 = vcmp.lt.s32.totalorder %v2715_v11, 15 }
   0xa   :  { %52 = vst [vmem:[#allocation2 + $0x80] sm:$0xff] %v4170_v3  ;;  %53 = vst [vmem:[#allocation2 + $0x88] sm:$0xff] %v4170_v3  ;;  %162 = vrot.lane.b32.xlu1 %v113_v4, %s2525_s10  ;;  %160 = vrot.lane.b32.xlu0 %v2582_v1, %s2525_s10  ;;  %v2737_v22 = vrot.slane %v32_v14, %v2724_v16  ;;  %v2741_v25 = vrot.slane %v25_v9, %v2722_v15  ;;  %vm252_vm4 = vcmp.lt.s32.totalorder %v2715_v11, 1  ;;  %vm507_vm12 = vcmask 596992  }
   0xb   :  { %54 = vst [vmem:[#allocation2 + $0x90] sm:$0xff] %v4170_v3  ;;  %55 = vst [vmem:[#allocation2 + $0x98] sm:$0xff] %v4170_v3  ;;  %v2767_v40 = vrot.slane %v25_v9, %v2724_v16  ;;  %v33_v42 = vmul.f32 %v2758_v34, %v25_v9  ;;  %v2810_v9 = vrot.slane %v2713_v10, %v2722_v15  ;;  %vm298_vm5 = vcmp.lt.s32.totalorder %v2715_v11, 127 }
   0xc   :  { %56 = vst [vmem:[#allocation2 + $0xa0] sm:$0xff] %v4170_v3  ;;  %57 = vst [vmem:[#allocation2 + $0xa8] sm:$0xff] %v4170_v3  ;;  %vm340_vm6 = vcmp.lt.s32.totalorder %v2715_v11, 113  ;;  %vm382_vm7 = vcmp.lt.s32.totalorder %v2715_v11, 112  ;;  %vm424_vm8 = vcmp.lt.s32.totalorder %v2715_v11, 111  ;;  %vm1098_vm13 = vcmask 138240  }
   0xd   :  { %58 = vst [vmem:[#allocation2 + $0xb0] sm:$0xff] %v4170_v3  ;;  %59 = vst [vmem:[#allocation2 + $0xb8] sm:$0xff] %v4170_v3  ;;  %v2784_v51 = vrot.slane %v33_v42, %v2722_v15  ;;  %v2790_v56 = vrot.slane %v33_v42, %v2717_v12  ;;  %v2793_v57 = vrot.slane %v33_v42, %v2724_v16 }
   0xe   :  { %60 = vst [vmem:[#allocation2 + $0xc0] sm:$0xff] %v4170_v3  ;;  %61 = vst [vmem:[#allocation2 + $0xc8] sm:$0xff] %v4170_v3  ;;  %166 = vrot.lane.b32.xlu1 %v2587_v2, %s2525_s10  ;;  %164 = vrot.lane.b32.xlu0 %v2577_v0, %s2525_s10  ;;  %v2796_v58 = vrot.slane %v33_v42, %v2719_v13 }
   0xf   :  { %62 = vst [vmem:[#allocation2 + $0xd0] sm:$0xff] %v4170_v3  ;;  %63 = vst [vmem:[#allocation2 + $0xd8] sm:$0xff] %v4170_v3 }
  0x10   :  { %64 = vst [vmem:[#allocation2 + $0xe0] sm:$0xff] %v4170_v3  ;;  %65 = vst [vmem:[#allocation2 + $0xe8] sm:$0xff] %v4170_v3 }
  0x11   :  { %66 = vst [vmem:[#allocation2 + $0xf0] sm:$0xff] %v4170_v3  ;;  %67 = vst [vmem:[#allocation2 + $0xf8] sm:$0xff] %v4170_v3 }
  0x12   :  { %68 = vst [vmem:[#allocation2 + $0x100] sm:$0xff] %v4170_v3  ;;  %69 = vst [vmem:[#allocation2 + $0x108] sm:$0xff] %v4170_v3  ;;  %204 = vrot.lane.b32.xlu1 %v113_v4, %s2526_s1  ;;  %202 = vrot.lane.b32.xlu0 %v2582_v1, %s2526_s1 }
  0x13   :  { %70 = vst [vmem:[#allocation2 + $0x110] sm:$0xff] %v4170_v3  ;;  %71 = vst [vmem:[#allocation2 + $0x118] sm:$0xff] %v4170_v3 }
  0x14   :  { %72 = vst [vmem:[#allocation2 + $0x120] sm:$0xff] %v4170_v3  ;;  %73 = vst [vmem:[#allocation2 + $0x128] sm:$0xff] %v4170_v3 }
  0x15   :  { %74 = vst [vmem:[#allocation2 + $0x130] sm:$0xff] %v4170_v3  ;;  %75 = vst [vmem:[#allocation2 + $0x138] sm:$0xff] %v4170_v3 }
  0x16   :  { %108 = vst [vmem:[#allocation2 + $0x240] sm:$0xff] %v4170_v3  ;;  %109 = vst [vmem:[#allocation2 + $0x248] sm:$0xff] %v4170_v3  ;;  %208 = vrot.lane.b32.xlu1 %v2587_v2, %s2526_s1  ;;  %206 = vrot.lane.b32.xlu0 %v2577_v0, %s2526_s1 }
  0x17   :  { %110 = vst [vmem:[#allocation2 + $0x250] sm:$0xff] %v4170_v3  ;;  %111 = vst [vmem:[#allocation2 + $0x258] sm:$0xff] %v4170_v3 }
  0x18   :  { %286 = vst [vmem:[#allocation2 + $0x80] sm:$0x3f] %v2582_v1  ;;  %288 = vst [vmem:[#allocation2 + $0x90] sm:$0x3f] %v2577_v0 }
  0x19   :  { %289 = vst [vmem:[#allocation2 + $0x98] sm:$0x3f] %v2587_v2  ;;  %287 = vst [vmem:[#allocation2 + $0x88] sm:$0x3f] %v113_v4 }
  0x1a   :  { %246 = vrot.lane.b32.xlu1 %v113_v4, %s2527_s11  ;;  %244 = vrot.lane.b32.xlu0 %v2582_v1, %s2527_s11  ;;  %463 = vst.msk [vmem:[#allocation2 + $0x120] ss:$8 sm:$0xf] %vm2683_vm0, %v2530_v7  ;;  %1018 = vst.msk [vmem:[#allocation2 + $0x240] ss:$8 sm:$0xf] %vm2683_vm0, %v2530_v7 }
  0x1b   :  { %4236 = vst [vmem:[#allocation3_spill] sm:$0xff] %v2734_v21  ;;  %4237 = vst [vmem:[#allocation4_spill] sm:$0xff] %v2737_v22 }
  0x1c   :  { %vm2954_vm11 = vmpackc.low %vm514_vm9, %vm2533_vm10 }
  0x1e   :  { %250 = vrot.lane.b32.xlu1 %v2587_v2, %s2527_s11  ;;  %248 = vrot.lane.b32.xlu0 %v2577_v0, %s2527_s11 }
  0x22   :  { %292 = vrot.lane.b32.xlu1 %v113_v4, %s2528_s12  ;;  %290 = vrot.lane.b32.xlu0 %v2582_v1, %s2528_s12 }
  0x26   :  { %296 = vrot.lane.b32.xlu1 %v2587_v2, %s2528_s12  ;;  %294 = vrot.lane.b32.xlu0 %v2577_v0, %s2528_s12 }
  0x2a   :  { %334 = vrot.lane.b32.xlu1 %v113_v4, %s2529_s13  ;;  %332 = vrot.lane.b32.xlu0 %v2582_v1, %s2529_s13 }
  0x2e   :  { %338 = vrot.lane.b32.xlu1 %v2587_v2, %s2529_s13  ;;  %336 = vrot.lane.b32.xlu0 %v2577_v0, %s2529_s13 }
  0x32   :  { %376 = vrot.lane.b32.xlu1 %v113_v4, %s2531_s14  ;;  %374 = vrot.lane.b32.xlu0 %v2582_v1, %s2531_s14 }
  0x36   :  { %380 = vrot.lane.b32.xlu1 %v2587_v2, %s2531_s14  ;;  %378 = vrot.lane.b32.xlu0 %v2577_v0, %s2531_s14 }
  0x3a   :  { %418 = vrot.lane.b32.xlu1 %v113_v4, %s2532_s15  ;;  %416 = vrot.lane.b32.xlu0 %v2582_v1, %s2532_s15 }
  0x3e   :  { %422 = vrot.lane.b32.xlu1 %v2587_v2, %s2532_s15  ;;  %420 = vrot.lane.b32.xlu0 %v2577_v0, %s2532_s15 }
  0x74   :  { %v121_v17 = vpop.permute.xlu1 %120  ;;  %v117_v18 = vpop.permute.xlu0 %116 }
  0x78   :  { %v123_v23 = vpop.permute.xlu1 %122  ;;  %v119_v24 = vpop.permute.xlu0 %118 }
  0x79   :  { %v127_v26 = vsel %vm126_vm1, %v121_v17, %v123_v23  ;;  %v130_v27 = vsel %vm126_vm1, %v123_v23, %v117_v18  ;;  %v128_v28 = vsel %vm126_vm1, %v119_v24, %v121_v17  ;;  %v129_v29 = vsel %vm126_vm1, %v117_v18, %v119_v24 }
  0x7a   :  { %v152_v30 = vmul.f32 %v2728_v19, %v130_v27  ;;  %v155_v31 = vmul.f32 %v2731_v20, %v127_v26  ;;  %v153_v32 = vmul.f32 %v2734_v21, %v129_v29  ;;  %v154_v33 = vmul.f32 %v2737_v22, %v128_v28 }
  0x7c   :  { %156 = vst [vmem:[#allocation2] sm:$0x3f] %v152_v30  ;;  %159 = vst [vmem:[#allocation2 + $0x18] sm:$0x3f] %v155_v31  ;;  %v163_v35 = vpop.permute.xlu1 %162  ;;  %v161_v36 = vpop.permute.xlu0 %160 }
  0x7d   :  { %157 = vst [vmem:[#allocation2 + $0x8] sm:$0x3f] %v153_v32  ;;  %158 = vst [vmem:[#allocation2 + $0x10] sm:$0x3f] %v154_v33  ;;  %v171_v37 = vsel %vm168_vm2, %v161_v36, %v163_v35  ;;  %v2816_v33 = vrot.slane %v2713_v10, %v2717_v12 }
  0x7e   :  { %v195_v39 = vmul.f32 %v2741_v25, %v171_v37  ;;  %v2825_v37 = vrot.slane %v2713_v10, %v2719_v13 }
  0x80   :  { %199 = vst [vmem:[#allocation2 + $0x28] sm:$0x3f] %v195_v39  ;;  %v167_v43 = vpop.permute.xlu1 %166  ;;  %v165_v44 = vpop.permute.xlu0 %164 }
  0x81   :  { %v172_v45 = vsel %vm168_vm2, %v167_v43, %v161_v36  ;;  %v169_v46 = vsel %vm168_vm2, %v165_v44, %v167_v43  ;;  %v170_v47 = vsel %vm168_vm2, %v163_v35, %v165_v44  ;;  %v2821_v36 = vrot.slane %v2713_v10, %v2724_v16 }
  0x82   :  { %v194_v48 = vmul.f32 %v2763_v38, %v172_v45  ;;  %v196_v49 = vmul.f32 %v2767_v40, %v170_v47  ;;  %v197_v50 = vmul.f32 %v2770_v41, %v169_v46 }
  0x83   :  { %v467_v14 = vld [vmem:[#allocation2] sm:$0xff]  ;;  %v470_v17 = vld [vmem:[#allocation2 + $0x18] sm:$0xff] }
  0x84   :  { %198 = vst [vmem:[#allocation2 + $0x20] sm:$0x3f] %v194_v48  ;;  %200 = vst [vmem:[#allocation2 + $0x30] sm:$0x3f] %v196_v49  ;;  %v205_v52 = vpop.permute.xlu1 %204  ;;  %v203_v53 = vpop.permute.xlu0 %202  ;;  %v468_v59 = vld [vmem:[#allocation2 + $0x8] sm:$0xff]  ;;  %v469_v18 = vld [vmem:[#allocation2 + $0x10] sm:$0xff]  ;;  %v2839_v49 = vrot.slane %v2758_v34, %v2717_v12 }
  0x85   :  { %201 = vst [vmem:[#allocation2 + $0x38] sm:$0x3f] %v197_v50  ;;  %v213_v54 = vsel %vm210_vm3, %v203_v53, %v205_v52  ;;  %v2844_v50 = vld [vmem:[%s4163_s0 + $0x1] ss:$4 sm:$0xf] }
  0x86   :  { %v237_v55 = vmul.f32 %v2784_v51, %v213_v54 }
  0x87   :  { %v472_v60 = vld [vmem:[#allocation2 + $0x28] sm:$0xff] }
  0x88   :  { %241 = vst [vmem:[#allocation2 + $0x48] sm:$0x3f] %v237_v55  ;;  %v209_v61 = vpop.permute.xlu1 %208  ;;  %v207_v62 = vpop.permute.xlu0 %206  ;;  %v2264_v63 = vpack.c.bf16 %v472_v60, %v468_v59  ;;  %v2850_v55 = vrot.slane %v2758_v34, %v2719_v13  ;;  %v2855_v60 = vrot.slane %v2758_v34, %v2722_v15 }
  0x89   :  { %v214_v0 = vsel %vm210_vm3, %v209_v61, %v203_v53  ;;  %v211_v1 = vsel %vm210_vm3, %v207_v62, %v209_v61  ;;  %v212_v2 = vsel %vm210_vm3, %v205_v52, %v207_v62  ;;  %v2859_v61 = vrot.slane %v2758_v34, %v2724_v16 }
  0x8a   :  { %v236_v4 = vmul.f32 %v2790_v56, %v214_v0  ;;  %v238_v5 = vmul.f32 %v2793_v57, %v212_v2  ;;  %v239_v8 = vmul.f32 %v2796_v58, %v211_v1  ;;  %2265 = vmatprep.subr.bf16.mxu0 %v2264_v63  ;;  %v34_v62 = vmul.f32 %v2713_v10, %v2844_v50 }
  0x8b   :  { %v471_v23 = vld [vmem:[#allocation2 + $0x20] sm:$0xff]  ;;  %v473_v26 = vld [vmem:[#allocation2 + $0x30] sm:$0xff] }
  0x8c   :  { %v474_v24 = vld [vmem:[#allocation2 + $0x38] sm:$0xff]  ;;  %240 = vst [vmem:[#allocation2 + $0x40] sm:$0x3f] %v236_v4  ;;  %242 = vst [vmem:[#allocation2 + $0x50] sm:$0x3f] %v238_v5  ;;  %v247_v27 = vpop.permute.xlu1 %246  ;;  %v245_v28 = vpop.permute.xlu0 %244  ;;  %v2266_v29 = vpack.c.bf16 %v471_v23, %v467_v14  ;;  %v2288_v31 = vpack.c.bf16 %v473_v26, %v469_v18  ;;  %v2874_v23 = vrot.slane %v34_v62, %v2717_v12 }
  0x8d   :  { %243 = vst [vmem:[#allocation2 + $0x58] sm:$0x3f] %v239_v8  ;;  %v2286_v30 = vpack.c.bf16 %v474_v24, %v470_v17  ;;  %v255_v32 = vsel %vm252_vm4, %v245_v28, %v247_v27 }
  0x8e   :  { %v279_v35 = vmul.f32 %v2810_v9, %v255_v32  ;;  %2267 = vmatpush1.bf16.msra.mxu0 %v2266_v29  ;;  %4238 = vst [vmem:[#allocation5_spill] sm:$0xff] %v2874_v23 }
  0x8f   :  { %2287 = vmatprep.subr.bf16.mxu1 %v2286_v30  ;;  %v476_v63 = vld [vmem:[#allocation2 + $0x48] sm:$0xff] }
  0x90   :  { %2289 = vmatpush1.bf16.msra.mxu1 %v2288_v31  ;;  %283 = vst [vmem:[#allocation2 + $0x68] sm:$0x3f] %v279_v35  ;;  %v251_v39 = vpop.permute.xlu1 %250  ;;  %v249_v42 = vpop.permute.xlu0 %248 }
  0x91   :  { %v256_v43 = vsel %vm252_vm4, %v251_v39, %v245_v28  ;;  %v253_v44 = vsel %vm252_vm4, %v249_v42, %v251_v39  ;;  %v254_v45 = vsel %vm252_vm4, %v247_v27, %v249_v42 }
  0x92   :  { %v278_v46 = vmul.f32 %v2816_v33, %v256_v43  ;;  %v280_v47 = vmul.f32 %v2821_v36, %v254_v45  ;;  %v281_v48 = vmul.f32 %v2825_v37, %v253_v44  ;;  %v2879_v44 = vrot.slane %v34_v62, %v2719_v13 }
  0x93   :  { %v475_v24 = vld [vmem:[#allocation2 + $0x40] sm:$0xff]  ;;  %v477_v27 = vld [vmem:[#allocation2 + $0x50] sm:$0xff] }
  0x94   :  { %282 = vst [vmem:[#allocation2 + $0x60] sm:$0x3f] %v278_v46  ;;  %284 = vst [vmem:[#allocation2 + $0x70] sm:$0x3f] %v280_v47  ;;  %v293_v52 = vpop.permute.xlu1 %292  ;;  %v291_v53 = vpop.permute.xlu0 %290  ;;  %v478_v26 = vld [vmem:[#allocation2 + $0x58] sm:$0xff]  ;;  %v2883_v46 = vrot.slane %v34_v62, %v2722_v15  ;;  %v2886_v47 = vrot.slane %v34_v62, %v2724_v16 }
  0x95   :  { %285 = vst [vmem:[#allocation2 + $0x78] sm:$0x3f] %v281_v48  ;;  %v301_v54 = vsel %vm298_vm5, %v291_v53, %v293_v52  ;;  %4239 = vst [vmem:[#allocation6_spill] sm:$0xff] %v2879_v44 }
  0x96   :  { %v324_v59 = vmul.f32 %v2839_v49, %v301_v54  ;;  %4240 = vst [vmem:[#allocation7_spill] sm:$0xff] %v2883_v46  ;;  %4241 = vst [vmem:[#allocation8_spill] sm:$0xff] %v2886_v47 }
  0x97   :  { %v480_v0 = vld [vmem:[#allocation2 + $0x68] sm:$0xff] }
  0x98   :  { %328 = vst [vmem:[#allocation2 + $0xa0] sm:$0x3f] %v324_v59  ;;  %v297_v1 = vpop.permute.xlu1 %296  ;;  %v295_v2 = vpop.permute.xlu0 %294  ;;  %v2268_v4 = vpack.c.bf16 %v480_v0, %v476_v63  ;;  %v484_v63 = vld [vmem:[#allocation2 + $0x88] sm:$0xff]  ;;  %v486_v0 = vld [vmem:[#allocation2 + $0x98] sm:$0xff] }
  0x99   :  { %v302_v5 = vsel %vm298_vm5, %v297_v1, %v291_v53  ;;  %v299_v8 = vsel %vm298_vm5, %v295_v2, %v297_v1  ;;  %v300_v14 = vsel %vm298_vm5, %v293_v52, %v295_v2  ;;  %v485_v1 = vld [vmem:[#allocation2 + $0x90] sm:$0xff] }
  0x9a   :  { %v327_v17 = vmul.f32 %v2850_v55, %v302_v5  ;;  %v325_v10 = vmul.f32 %v2855_v60, %v300_v14  ;;  %v326_v18 = vmul.f32 %v2859_v61, %v299_v8  ;;  %2269 = vmatprep.subr.bf16.mxu0 %v2268_v4  ;;  %v2900_v5 = vrot.slane %v2844_v50, %v2717_v12  ;;  %v483_v8 = vld [vmem:[#allocation2 + $0x80] sm:$0xff] }
  0x9b   :  { %v479_v28 = vld [vmem:[#allocation2 + $0x60] sm:$0xff]  ;;  %v481_v30 = vld [vmem:[#allocation2 + $0x70] sm:$0xff] }
  0x9c   :  { %v482_v29 = vld [vmem:[#allocation2 + $0x78] sm:$0xff]  ;;  %331 = vst [vmem:[#allocation2 + $0xb8] sm:$0x3f] %v327_v17  ;;  %329 = vst [vmem:[#allocation2 + $0xa8] sm:$0x3f] %v325_v10  ;;  %v335_v31 = vpop.permute.xlu1 %334  ;;  %v333_v32 = vpop.permute.xlu0 %332  ;;  %v2270_v35 = vpack.c.bf16 %v479_v28, %v475_v24  ;;  %v2292_v42 = vpack.c.bf16 %v481_v30, %v477_v27 }
  0x9d   :  { %330 = vst [vmem:[#allocation2 + $0xb0] sm:$0x3f] %v326_v18  ;;  %v2290_v39 = vpack.c.bf16 %v482_v29, %v478_v26  ;;  %v343_v43 = vsel %vm340_vm6, %v333_v32, %v335_v31  ;;  %4242 = vst [vmem:[#allocation9_spill] sm:$0xff] %v2900_v5 }
  0x9e   :  { %v366_v45 = vmul.f32 %v2874_v23, %v343_v43  ;;  %2271 = vmatpush1.bf16.msra.mxu0 %v2270_v35  ;;  %v2910_v35 = vrot.slane %v2844_v50, %v2722_v15  ;;  %v35_v43 = vmul.f32 %v2758_v34, %v2844_v50 }
  0x9f   :  { %2291 = vmatprep.subr.bf16.mxu1 %v2290_v39  ;;  %v487_v14 = vld [vmem:[#allocation2 + $0xa0] sm:$0xff] }
  0xa0   :  { %2293 = vmatpush1.bf16.msra.mxu1 %v2292_v42  ;;  %370 = vst [vmem:[#allocation2 + $0xc0] sm:$0x3f] %v366_v45  ;;  %v339_v48 = vpop.permute.xlu1 %338  ;;  %v337_v52 = vpop.permute.xlu0 %336  ;;  %4244 = vst [vmem:[#allocation11_spill] sm:$0xff] %v2910_v35  ;;  %v2915_v42 = vrot.slane %v2844_v50, %v2724_v16 }
  0xa1   :  { %v344_v53 = vsel %vm340_vm6, %v339_v48, %v333_v32  ;;  %v341_v54 = vsel %vm340_vm6, %v337_v52, %v339_v48  ;;  %v342_v59 = vsel %vm340_vm6, %v335_v31, %v337_v52  ;;  %v2274_v31 = vpack.c.bf16 %v487_v14, %v483_v8 }
  0xa2   :  { %v369_v62 = vmul.f32 %v2879_v44, %v344_v53  ;;  %v367_v2 = vmul.f32 %v2883_v46, %v342_v59  ;;  %v368_v4 = vmul.f32 %v2886_v47, %v341_v54  ;;  %v2906_v32 = vrot.slane %v2844_v50, %v2719_v13  ;;  %4245 = vst [vmem:[#allocation12_spill] sm:$0xff] %v2915_v42 }
  0xa3   :  { %v488_v17 = vld [vmem:[#allocation2 + $0xa8] sm:$0xff]  ;;  %v490_v10 = vld [vmem:[#allocation2 + $0xb8] sm:$0xff]  ;;  %v2939_v8 = vrot.slane %v35_v43, %v2722_v15  ;;  %v2942_v14 = vrot.slane %v35_v43, %v2724_v16 }
  0xa4   :  { %v489_v18 = vld [vmem:[#allocation2 + $0xb0] sm:$0xff]  ;;  %373 = vst [vmem:[#allocation2 + $0xd8] sm:$0x3f] %v369_v62  ;;  %371 = vst [vmem:[#allocation2 + $0xc8] sm:$0x3f] %v367_v2  ;;  %v377_v24 = vpop.permute.xlu1 %376  ;;  %v375_v26 = vpop.permute.xlu0 %374  ;;  %v2272_v27 = vpack.c.bf16 %v488_v17, %v484_v63  ;;  %v2294_v28 = vpack.c.bf16 %v490_v10, %v486_v0  ;;  %v2930_v63 = vrot.slane %v35_v43, %v2717_v12 }
  0xa5   :  { %372 = vst [vmem:[#allocation2 + $0xd0] sm:$0x3f] %v368_v4  ;;  %v2296_v29 = vpack.c.bf16 %v489_v18, %v485_v1  ;;  %v385_v30 = vsel %vm382_vm7, %v375_v26, %v377_v24  ;;  %4243 = vst [vmem:[#allocation10_spill] sm:$0xff] %v2906_v32  ;;  %v2936_v4 = vrot.slane %v35_v43, %v2719_v13 }
  0xa6   :  { %v408_v39 = vmul.f32 %v2900_v5, %v385_v30  ;;  %2273 = vmatprep.subr.bf16.mxu0 %v2272_v27  ;;  %2295 = vmatprep.subr.bf16.mxu1 %v2294_v28  ;;  %4246 = vst [vmem:[#allocation13_spill] sm:$0xff] %v2930_v63  ;;  %4248 = vst [vmem:[#allocation15_spill] sm:$0xff] %v2939_v8 }
  0xa7   :  { %2275 = vmatpush1.bf16.msra.mxu0 %v2274_v31  ;;  %2297 = vmatpush1.bf16.msra.mxu1 %v2296_v29  ;;  %4247 = vst [vmem:[#allocation14_spill] sm:$0xff] %v2936_v4  ;;  %4249 = vst [vmem:[#allocation16_spill] sm:$0xff] %v2942_v14 }
  0xa8   :  { %412 = vst [vmem:[#allocation2 + $0xe0] sm:$0x3f] %v408_v39  ;;  %v381_v45 = vpop.permute.xlu1 %380  ;;  %v379_v48 = vpop.permute.xlu0 %378 }
  0xa9   :  { %v386_v52 = vsel %vm382_vm7, %v381_v45, %v375_v26  ;;  %v383_v53 = vsel %vm382_vm7, %v379_v48, %v381_v45  ;;  %v384_v54 = vsel %vm382_vm7, %v377_v24, %v379_v48  ;;  %v491_v48 = vld [vmem:[#allocation2 + $0xc0] sm:$0xff] }
  0xaa   :  { %v411_v59 = vmul.f32 %v2906_v32, %v386_v52  ;;  %v409_v34 = vmul.f32 %v2910_v35, %v384_v54  ;;  %v410_v50 = vmul.f32 %v2915_v42, %v383_v53  ;;  %v504_v54 = vld [vmem:[#allocation2 + $0x128] sm:$0x1] }
  0xab   :  { %v492_v13 = vld [vmem:[#allocation2 + $0xc8] sm:$0xff]  ;;  %v494_v27 = vld [vmem:[#allocation2 + $0xd8] sm:$0xff] }
  0xac   :  { %415 = vst [vmem:[#allocation2 + $0xf8] sm:$0x3f] %v411_v59  ;;  %413 = vst [vmem:[#allocation2 + $0xe8] sm:$0x3f] %v409_v34  ;;  %v419_v0 = vpop.permute.xlu1 %418  ;;  %v417_v1 = vpop.permute.xlu0 %416  ;;  %v493_v29 = vld [vmem:[#allocation2 + $0xd0] sm:$0xff] }
  0xad   :  { %414 = vst [vmem:[#allocation2 + $0xf0] sm:$0x3f] %v410_v50  ;;  %v427_v62 = vsel %vm424_vm8, %v417_v1, %v419_v0  ;;  %v506_v59 = vld [vmem:[#allocation2 + $0x138] sm:$0x1]  ;;  %v505_v34 = vld [vmem:[#allocation2 + $0x130] sm:$0x1] }
  0xae   :  { %v450_v2 = vmul.f32 %v2930_v63, %v427_v62  ;;  %v4250_v50 = vmov 0 }
  0xaf   :  { %v495_v28 = vld [vmem:[#allocation2 + $0xe0] sm:$0xff]  ;;  %v4251_v50 = vsel %vm2954_vm11, 4294967295, %v4250_v50 }
  0xb0   :  { %454 = vst [vmem:[#allocation2 + $0x100] sm:$0x3f] %v450_v2  ;;  %v423_v12 = vpop.permute.xlu1 %422  ;;  %v421_v17 = vpop.permute.xlu0 %420  ;;  %v2278_v53 = vpack.c.bf16 %v495_v28, %v491_v48  ;;  %4252 = vst [vmem:[#allocation17_spill] sm:$0xff] %v4251_v50 }
  0xb1   :  { %v428_v10 = vsel %vm424_vm8, %v423_v12, %v417_v1  ;;  %v425_v18 = vsel %vm424_vm8, %v421_v17, %v423_v12  ;;  %v426_v24 = vsel %vm424_vm8, %v419_v0, %v421_v17  ;;  %v503_v1 = vld [vmem:[#allocation2 + $0x120] sm:$0x1] }
  0xb2   :  { %v453_v26 = vmul.f32 %v2936_v4, %v428_v10  ;;  %v451_v15 = vmul.f32 %v2939_v8, %v426_v24  ;;  %v452_v16 = vmul.f32 %v2942_v14, %v425_v18 }
  0xb3   :  { %v496_v30 = vld [vmem:[#allocation2 + $0xe8] sm:$0xff]  ;;  %v498_v31 = vld [vmem:[#allocation2 + $0xf8] sm:$0xff] }
  0xb4   :  { %v497_v39 = vld [vmem:[#allocation2 + $0xf0] sm:$0xff]  ;;  %457 = vst [vmem:[#allocation2 + $0x118] sm:$0x3f] %v453_v26  ;;  %455 = vst [vmem:[#allocation2 + $0x108] sm:$0x3f] %v451_v15  ;;  %v2276_v43 = vpack.c.bf16 %v496_v30, %v492_v13  ;;  %v2298_v45 = vpack.c.bf16 %v498_v31, %v494_v27  ;;  %v465_v13 = vld [vmem:[%s4164_s2] sm:$0xff] }
  0xb5   :  { %456 = vst [vmem:[#allocation2 + $0x110] sm:$0x3f] %v452_v16  ;;  %v2300_v52 = vpack.c.bf16 %v497_v39, %v493_v29  ;;  %v466_v26 = vld [vmem:[%s4164_s2 + $0x8] sm:$0xff] }
  0xb6   :  { %2277 = vmatprep.subr.bf16.mxu0 %v2276_v43  ;;  %2299 = vmatprep.subr.bf16.mxu1 %v2298_v45 }
  0xb7   :  { %2279 = vmatpush1.bf16.msra.mxu0 %v2278_v53  ;;  %2301 = vmatpush1.bf16.msra.mxu1 %v2300_v52  ;;  %v499_v0 = vld [vmem:[#allocation2 + $0x100] sm:$0xff] }
  0xb8   :  { %v2283_v24 = vpack.c.bf16 %v503_v1, %v499_v0 }
  0xbb   :  { %v500_v62 = vld [vmem:[#allocation2 + $0x108] sm:$0xff]  ;;  %v502_v2 = vld [vmem:[#allocation2 + $0x118] sm:$0xff] }
  0xbc   :  { %v501_v12 = vld [vmem:[#allocation2 + $0x110] sm:$0xff]  ;;  %v2280_v17 = vpack.c.bf16 %v504_v54, %v500_v62  ;;  %v2302_v10 = vpack.c.bf16 %v506_v59, %v502_v2 }
  0xbd   :  { %v2305_v18 = vpack.c.bf16 %v505_v34, %v501_v12 }
  0xbe   :  { %2282 = vmatprep.subr.msk.bf16.mxu0 %vm2954_vm11, %v2280_v17  ;;  %2304 = vmatprep.subr.msk.bf16.mxu1 %vm2954_vm11, %v2302_v10  ;;  %v3133_v17 = vld [vmem:[#allocation2 + $0x248] sm:$0x1] }
  0xbf   :  { %2285 = vmatpush1.bf16.msk.msra.mxu0 %vm2954_vm11, %v2283_v24  ;;  %2307 = vmatpush1.bf16.msk.msra.mxu1 %vm2954_vm11, %v2305_v18  ;;  %4253 = vst [vmem:[#allocation18_spill] sm:$0xff] %v3133_v17  ;;  %v1021_v10 = vld [vmem:[%s4165_s3 + $0x8] sm:$0x3f] }
  0xc2   :  { %2238 = vmatmul.mubr.msk.f32.vlgmr.msra.gmra.mrb[0].mxu0 %vm507_vm12, %v465_v13  ;;  %2242 = vmatmul.mubr.msk.f32.vlgmr.msra.gmra.mrb[0].mxu1 %vm507_vm12, %v465_v13  ;;  %v3142_v13 = vld [vmem:[#allocation2 + $0x240] sm:$0x1] }
  0xc3   :  { %597 = vmatprep.mubr.f32.mxu0 %v4170_v3  ;;  %674 = vmatprep.mubr.f32.mxu1 %v4170_v3  ;;  %4254 = vst [vmem:[#allocation19_spill] sm:$0xff] %v3142_v13 }
  0xc6   :  { %2239 = vmatmul.mubr.msk.f32.gmra.mrb[2].mxu0 %vm507_vm12, %v466_v26  ;;  %2243 = vmatmul.mubr.msk.f32.gmra.mrb[2].mxu1 %vm507_vm12, %v466_v26  ;;  %v3145_v26 = vld [vmem:[#allocation2 + $0x258] sm:$0x1] }
  0xc7   :  { %2246 = vmatprep.mubr.msk.f32.mxu0 %vm1098_vm13, %v1021_v10  ;;  %4255 = vst [vmem:[#allocation20_spill] sm:$0xff] %v3145_v26  ;;  %2249 = vmatprep.mubr.msk.f32.mxu1 %vm1098_vm13, %v1021_v10 }
 0x195   :  { %v593_v15 = vpop.f32.mrb[0].mxu0  ;;  %v670_v16 = vpop.f32.mrb[0].mxu1 }
 0x196   :  { %v2978_v27 = vmax.f32 %v593_v15, 0.0  ;;  %v595_v28 = vpop.f32.mrb[1].mxu0  ;;  %v2980_v29 = vmax.f32 %v670_v16, 0.0  ;;  %v672_v30 = vpop.f32.mrb[1].mxu1  ;;  %v3147_v15 = vld [vmem:[#allocation2 + $0x250] sm:$0x1] }
 0x197   :  { %v2982_v31 = vmax.f32 %v595_v28, 0.0  ;;  %v2984_v39 = vmax.f32 %v672_v30, 0.0  ;;  %4256 = vst [vmem:[#allocation21_spill] sm:$0xff] %v3147_v15  ;;  %1980 = vst.msk [vmem:[#allocation2 + $0x240] ss:$8 sm:$0xf] %vm2683_vm0, %v2530_v7 }
 0x198   :  { %849 = vst [vmem:[#allocation2 + $0x100] sm:$0xff] %v2978_v27  ;;  %851 = vst [vmem:[#allocation2 + $0x110] sm:$0xff] %v2980_v29  ;;  %689 = vrot.lane.b32.xlu0 %v2978_v27, %s2524_s30 }
 0x199   :  { %850 = vst [vmem:[#allocation2 + $0x108] sm:$0xff] %v2982_v31  ;;  %852 = vst [vmem:[#allocation2 + $0x118] sm:$0xff] %v2984_v39  ;;  %v599_v43 = vpop.f32.mrb[2].mxu0  ;;  %v676_v45 = vpop.f32.mrb[2].mxu1 }
 0x19a   :  { %v2992_v48 = vmax.f32 %v599_v43, 0.0  ;;  %v2994_v52 = vmax.f32 %v676_v45, 0.0  ;;  %v601_v53 = vpop.f32.mrb[3].mxu0  ;;  %v678_v54 = vpop.f32.mrb[3].mxu1 }
 0x19b   :  { %v2996_v59 = vmax.f32 %v601_v53, 0.0  ;;  %v2998_v34 = vmax.f32 %v678_v54, 0.0 }
 0x19c   :  { %853 = vst [vmem:[#allocation2 + $0x120] sm:$0xff] %v2992_v48  ;;  %855 = vst [vmem:[#allocation2 + $0x130] sm:$0xff] %v2994_v52  ;;  %697 = vrot.lane.b32.xlu0 %v2980_v29, %s2524_s30  ;;  %691 = vrot.lane.b32.xlu1 %v2992_v48, %s2524_s30 }
 0x19d   :  { %854 = vst [vmem:[#allocation2 + $0x128] sm:$0xff] %v2996_v59  ;;  %856 = vst [vmem:[#allocation2 + $0x138] sm:$0xff] %v2998_v34 }
 0x19e   :  { %1428 = vst.msk [vmem:[#allocation2 + $0x120] ss:$8 sm:$0xf] %vm2683_vm0, %v2530_v7  ;;  %v2058_v11 = vld [vmem:[#allocation2 + $0x250] sm:$0x1] }
 0x1a0   :  { %729 = vrot.lane.b32.xlu0 %v2978_v27, %s2525_s10  ;;  %699 = vrot.lane.b32.xlu1 %v2994_v52, %s2524_s30 }
 0x1a4   :  { %737 = vrot.lane.b32.xlu0 %v2980_v29, %s2525_s10  ;;  %731 = vrot.lane.b32.xlu1 %v2992_v48, %s2525_s10 }
 0x1a8   :  { %769 = vrot.lane.b32.xlu0 %v2978_v27, %s2526_s1  ;;  %739 = vrot.lane.b32.xlu1 %v2994_v52, %s2525_s10 }
 0x1ac   :  { %777 = vrot.lane.b32.xlu0 %v2980_v29, %s2526_s1  ;;  %771 = vrot.lane.b32.xlu1 %v2992_v48, %s2526_s1 }
 0x1b0   :  { %809 = vrot.lane.b32.xlu0 %v2978_v27, %s2527_s11  ;;  %779 = vrot.lane.b32.xlu1 %v2994_v52, %s2526_s1 }
 0x1b4   :  { %817 = vrot.lane.b32.xlu0 %v2980_v29, %s2527_s11  ;;  %811 = vrot.lane.b32.xlu1 %v2992_v48, %s2527_s11 }
 0x1b8   :  { %857 = vrot.lane.b32.xlu0 %v2978_v27, %s2528_s12  ;;  %819 = vrot.lane.b32.xlu1 %v2994_v52, %s2527_s11 }
 0x1bc   :  { %865 = vrot.lane.b32.xlu0 %v2980_v29, %s2528_s12  ;;  %859 = vrot.lane.b32.xlu1 %v2992_v48, %s2528_s12 }
 0x1c0   :  { %897 = vrot.lane.b32.xlu0 %v2978_v27, %s2529_s13  ;;  %867 = vrot.lane.b32.xlu1 %v2994_v52, %s2528_s12 }
 0x1c4   :  { %905 = vrot.lane.b32.xlu0 %v2980_v29, %s2529_s13  ;;  %899 = vrot.lane.b32.xlu1 %v2992_v48, %s2529_s13 }
 0x1c8   :  { %937 = vrot.lane.b32.xlu0 %v2978_v27, %s2531_s14  ;;  %907 = vrot.lane.b32.xlu1 %v2994_v52, %s2529_s13 }
 0x1cc   :  { %945 = vrot.lane.b32.xlu0 %v2980_v29, %s2531_s14  ;;  %939 = vrot.lane.b32.xlu1 %v2992_v48, %s2531_s14 }
 0x1d0   :  { %977 = vrot.lane.b32.xlu0 %v2978_v27, %s2532_s15  ;;  %947 = vrot.lane.b32.xlu1 %v2994_v52, %s2531_s14 }
 0x1d4   :  { %985 = vrot.lane.b32.xlu0 %v2980_v29, %s2532_s15  ;;  %979 = vrot.lane.b32.xlu1 %v2992_v48, %s2532_s15 }
 0x1d8   :  { %693 = vrot.lane.b32.xlu0 %v2982_v31, %s2524_s30  ;;  %987 = vrot.lane.b32.xlu1 %v2994_v52, %s2532_s15 }
 0x1dc   :  { %701 = vrot.lane.b32.xlu0 %v2984_v39, %s2524_s30  ;;  %695 = vrot.lane.b32.xlu1 %v2996_v59, %s2524_s30 }
 0x1e0   :  { %733 = vrot.lane.b32.xlu0 %v2982_v31, %s2525_s10  ;;  %703 = vrot.lane.b32.xlu1 %v2998_v34, %s2524_s30 }
 0x1e4   :  { %741 = vrot.lane.b32.xlu0 %v2984_v39, %s2525_s10  ;;  %735 = vrot.lane.b32.xlu1 %v2996_v59, %s2525_s10 }
 0x1e8   :  { %773 = vrot.lane.b32.xlu0 %v2982_v31, %s2526_s1  ;;  %743 = vrot.lane.b32.xlu1 %v2998_v34, %s2525_s10 }
 0x1ec   :  { %781 = vrot.lane.b32.xlu0 %v2984_v39, %s2526_s1  ;;  %775 = vrot.lane.b32.xlu1 %v2996_v59, %s2526_s1 }
 0x1f0   :  { %813 = vrot.lane.b32.xlu0 %v2982_v31, %s2527_s11  ;;  %783 = vrot.lane.b32.xlu1 %v2998_v34, %s2526_s1 }
 0x1f4   :  { %821 = vrot.lane.b32.xlu0 %v2984_v39, %s2527_s11  ;;  %815 = vrot.lane.b32.xlu1 %v2996_v59, %s2527_s11 }
 0x1f8   :  { %861 = vrot.lane.b32.xlu0 %v2982_v31, %s2528_s12  ;;  %823 = vrot.lane.b32.xlu1 %v2998_v34, %s2527_s11 }
 0x1fc   :  { %869 = vrot.lane.b32.xlu0 %v2984_v39, %s2528_s12  ;;  %863 = vrot.lane.b32.xlu1 %v2996_v59, %s2528_s12 }
 0x200   :  { %901 = vrot.lane.b32.xlu0 %v2982_v31, %s2529_s13  ;;  %871 = vrot.lane.b32.xlu1 %v2998_v34, %s2528_s12 }
 0x204   :  { %909 = vrot.lane.b32.xlu0 %v2984_v39, %s2529_s13  ;;  %903 = vrot.lane.b32.xlu1 %v2996_v59, %s2529_s13 }
 0x208   :  { %941 = vrot.lane.b32.xlu0 %v2982_v31, %s2531_s14  ;;  %911 = vrot.lane.b32.xlu1 %v2998_v34, %s2529_s13 }
 0x20a   :  { %v690_v62 = vpop.permute.xlu0 %689 }
 0x20c   :  { %949 = vrot.lane.b32.xlu0 %v2984_v39, %s2531_s14  ;;  %943 = vrot.lane.b32.xlu1 %v2996_v59, %s2531_s14 }
 0x20e   :  { %v698_v2 = vpop.permute.xlu0 %697  ;;  %v3127_v12 = vpop.permute.xlu1 %691 }
 0x210   :  { %981 = vrot.lane.b32.xlu0 %v2982_v31, %s2532_s15  ;;  %951 = vrot.lane.b32.xlu1 %v2998_v34, %s2531_s14 }
 0x212   :  { %v3138_v18 = vpop.permute.xlu0 %729  ;;  %v3140_v24 = vpop.permute.xlu1 %699 }
 0x214   :  { %989 = vrot.lane.b32.xlu0 %v2984_v39, %s2532_s15  ;;  %983 = vrot.lane.b32.xlu1 %v2996_v59, %s2532_s15 }
 0x216   :  { %v3157_v16 = vpop.permute.xlu0 %737  ;;  %v3159_v28 = vpop.permute.xlu1 %731 }
 0x218   :  { %991 = vrot.lane.b32.xlu1 %v2998_v34, %s2532_s15 }
 0x21a   :  { %v3163_v30 = vpop.permute.xlu0 %769  ;;  %v3165_v43 = vpop.permute.xlu1 %739 }
 0x21e   :  { %v3167_v45 = vpop.permute.xlu0 %777  ;;  %v3169_v6 = vpop.permute.xlu1 %771 }
 0x222   :  { %v3171_v7 = vpop.permute.xlu0 %809  ;;  %v3173_v53 = vpop.permute.xlu1 %779 }
 0x226   :  { %v3175_v54 = vpop.permute.xlu0 %817  ;;  %v3177_v10 = vpop.permute.xlu1 %811 }
 0x22a   :  { %v3179_v3 = vpop.permute.xlu0 %857  ;;  %v3181_v1 = vpop.permute.xlu1 %819 }
 0x22e   :  { %v3183_v0 = vpop.permute.xlu0 %865  ;;  %v3185_v50 = vpop.permute.xlu1 %859 }
 0x232   :  { %v3187_v15 = vpop.permute.xlu0 %897  ;;  %v3189_v26 = vpop.permute.xlu1 %867 }
 0x236   :  { %v3191_v13 = vpop.permute.xlu0 %905  ;;  %v3193_v17 = vpop.permute.xlu1 %899 }
 0x237   :  { %4257 = vst [vmem:[#allocation22_spill] sm:$0xff] %v3193_v17 }
 0x23a   :  { %v3195_v4 = vpop.permute.xlu0 %937  ;;  %v3197_v14 = vpop.permute.xlu1 %907 }
 0x23b   :  { %4258 = vst [vmem:[#allocation23_spill] sm:$0xff] %v3195_v4  ;;  %4259 = vst [vmem:[#allocation24_spill] sm:$0xff] %v3197_v14 }
 0x23e   :  { %v3199_v8 = vpop.permute.xlu0 %945  ;;  %v3201_v63 = vpop.permute.xlu1 %939 }
 0x23f   :  { %4260 = vst [vmem:[#allocation25_spill] sm:$0xff] %v3199_v8  ;;  %4261 = vst [vmem:[#allocation26_spill] sm:$0xff] %v3201_v63 }
 0x242   :  { %v3203_v32 = vpop.permute.xlu0 %977  ;;  %v3205_v42 = vpop.permute.xlu1 %947 }
 0x243   :  { %4262 = vst [vmem:[#allocation27_spill] sm:$0xff] %v3203_v32  ;;  %4263 = vst [vmem:[#allocation28_spill] sm:$0xff] %v3205_v42 }
 0x246   :  { %v3207_v35 = vpop.permute.xlu0 %985  ;;  %v3209_v5 = vpop.permute.xlu1 %979 }
 0x247   :  { %4264 = vst [vmem:[#allocation29_spill] sm:$0xff] %v3207_v35  ;;  %4265 = vst [vmem:[#allocation30_spill] sm:$0xff] %v3209_v5 }
 0x24a   :  { %v694_v44 = vpop.permute.xlu0 %693  ;;  %v3211_v47 = vpop.permute.xlu1 %987 }
 0x24b   :  { %4266 = vst [vmem:[#allocation31_spill] sm:$0xff] %v3211_v47  ;;  %v707_v4 = vsel %vm126_vm1, %v694_v44, %v698_v2  ;;  %v709_v46 = vsel %vm126_vm1, %v690_v62, %v694_v44 }
 0x24c   :  { %v714_v8 = vmul.f32 %v709_v46, %v2734_v21  ;;  %v715_v63 = vmul.f32 %v707_v4, %v2737_v22 }
 0x24e   :  { %722 = vst [vmem:[#allocation2 + $0x8] sm:$0xff] %v714_v8  ;;  %723 = vst [vmem:[#allocation2 + $0x10] sm:$0xff] %v715_v63  ;;  %v702_v32 = vpop.permute.xlu0 %701  ;;  %v696_v42 = vpop.permute.xlu1 %695 }
 0x24f   :  { %v705_v5 = vsel %vm126_vm1, %v698_v2, %v702_v32  ;;  %v711_v47 = vsel %vm126_vm1, %v702_v32, %v690_v62  ;;  %v708_v35 = vsel %vm126_vm1, %v696_v42, %v3140_v24  ;;  %v710_v44 = vsel %vm126_vm1, %v3127_v12, %v696_v42 }
 0x250   :  { %v713_v46 = vmul.f32 %v711_v47, %v2728_v19  ;;  %v716_v4 = vmul.f32 %v705_v5, %v2731_v20  ;;  %v718_v23 = vmul.f32 %v710_v44, %v2734_v21  ;;  %v719_v17 = vmul.f32 %v708_v35, %v2737_v22 }
 0x252   :  { %721 = vst [vmem:[#allocation2] sm:$0xff] %v713_v46  ;;  %724 = vst [vmem:[#allocation2 + $0x18] sm:$0xff] %v716_v4  ;;  %v734_v32 = vpop.permute.xlu0 %733  ;;  %v704_v62 = vpop.permute.xlu1 %703  ;;  %v2308_v2 = vpack.c.bf16 %v718_v23, %v714_v8 }
 0x253   :  { %726 = vst [vmem:[#allocation2 + $0x28] sm:$0xff] %v718_v23  ;;  %727 = vst [vmem:[#allocation2 + $0x30] sm:$0xff] %v719_v17  ;;  %v747_v14 = vsel %vm168_vm2, %v734_v32, %v3157_v16  ;;  %v749_v47 = vsel %vm168_vm2, %v3138_v18, %v734_v32  ;;  %v706_v5 = vsel %vm126_vm1, %v3140_v24, %v704_v62 }
 0x254   :  { %v712_v35 = vsel %vm126_vm1, %v704_v62, %v3127_v12  ;;  %v754_v42 = vmul.f32 %v749_v47, %v2741_v25  ;;  %v3247_v23 = vmul.f32 %v747_v14, %v2767_v40  ;;  %v720_v44 = vmul.f32 %v706_v5, %v2731_v20  ;;  %2309 = vmatprep.subr.bf16.mxu0 %v2308_v2 }
 0x255   :  { %v717_v8 = vmul.f32 %v712_v35, %v2728_v19  ;;  %v2346_v12 = vpack.c.bf16 %v719_v17, %v715_v63 }
 0x256   :  { %762 = vst [vmem:[#allocation2 + $0x48] sm:$0xff] %v754_v42  ;;  %763 = vst [vmem:[#allocation2 + $0x50] sm:$0xff] %v3247_v23  ;;  %v742_v24 = vpop.permute.xlu0 %741  ;;  %v736_v32 = vpop.permute.xlu1 %735  ;;  %v2344_v21 = vpack.c.bf16 %v720_v44, %v716_v4 }
 0x257   :  { %725 = vst [vmem:[#allocation2 + $0x20] sm:$0xff] %v717_v8  ;;  %728 = vst [vmem:[#allocation2 + $0x38] sm:$0xff] %v720_v44  ;;  %v2310_v22 = vpack.c.bf16 %v717_v8, %v713_v46  ;;  %v745_v14 = vsel %vm168_vm2, %v3157_v16, %v742_v24  ;;  %v751_v62 = vsel %vm168_vm2, %v742_v24, %v3138_v18 }
 0x258   :  { %v748_v2 = vsel %vm168_vm2, %v736_v32, %v3165_v43  ;;  %v750_v47 = vsel %vm168_vm2, %v3159_v28, %v736_v32  ;;  %v753_v46 = vmul.f32 %v751_v62, %v2763_v38  ;;  %v756_v63 = vmul.f32 %v745_v14, %v2770_v41  ;;  %2345 = vmatprep.subr.bf16.mxu1 %v2344_v21 }
 0x259   :  { %v758_v17 = vmul.f32 %v750_v47, %v2741_v25  ;;  %v759_v16 = vmul.f32 %v748_v2, %v2767_v40  ;;  %2311 = vmatpush1.bf16.msra.mxu0 %v2310_v22  ;;  %2347 = vmatpush1.bf16.msra.mxu1 %v2346_v12 }
 0x25a   :  { %761 = vst [vmem:[#allocation2 + $0x40] sm:$0xff] %v753_v46  ;;  %764 = vst [vmem:[#allocation2 + $0x58] sm:$0xff] %v756_v63  ;;  %v774_v18 = vpop.permute.xlu0 %773  ;;  %v744_v4 = vpop.permute.xlu1 %743 }
 0x25b   :  { %766 = vst [vmem:[#allocation2 + $0x68] sm:$0xff] %v758_v17  ;;  %767 = vst [vmem:[#allocation2 + $0x70] sm:$0xff] %v759_v16  ;;  %v2312_v5 = vpack.c.bf16 %v758_v17, %v754_v42  ;;  %v787_v35 = vsel %vm210_vm3, %v774_v18, %v3167_v45  ;;  %v789_v8 = vsel %vm210_vm3, %v3163_v30, %v774_v18 }
 0x25c   :  { %v746_v21 = vsel %vm168_vm2, %v3165_v43, %v744_v4  ;;  %v752_v22 = vsel %vm168_vm2, %v744_v4, %v3159_v28  ;;  %v794_v44 = vmul.f32 %v789_v8, %v2784_v51  ;;  %v3282_v42 = vmul.f32 %v787_v35, %v2793_v57 }
 0x25d   :  { %v757_v24 = vmul.f32 %v752_v22, %v2763_v38  ;;  %v760_v32 = vmul.f32 %v746_v21, %v2770_v41  ;;  %2313 = vmatprep.subr.bf16.mxu0 %v2312_v5  ;;  %v2350_v28 = vpack.c.bf16 %v759_v16, %v3247_v23 }
 0x25e   :  { %802 = vst [vmem:[#allocation2 + $0x88] sm:$0xff] %v794_v44  ;;  %803 = vst [vmem:[#allocation2 + $0x90] sm:$0xff] %v3282_v42  ;;  %v782_v43 = vpop.permute.xlu0 %781  ;;  %v776_v12 = vpop.permute.xlu1 %775 }
 0x25f   :  { %765 = vst [vmem:[#allocation2 + $0x60] sm:$0xff] %v757_v24  ;;  %768 = vst [vmem:[#allocation2 + $0x78] sm:$0xff] %v760_v32  ;;  %v2314_v14 = vpack.c.bf16 %v757_v24, %v753_v46  ;;  %v2348_v62 = vpack.c.bf16 %v760_v32, %v756_v63  ;;  %v785_v2 = vsel %vm210_vm3, %v3167_v45, %v782_v43 }
 0x260   :  { %v791_v47 = vsel %vm210_vm3, %v782_v43, %v3163_v30  ;;  %v788_v17 = vsel %vm210_vm3, %v776_v12, %v3173_v53  ;;  %v790_v18 = vsel %vm210_vm3, %v3169_v6, %v776_v12  ;;  %v796_v23 = vmul.f32 %v785_v2, %v2796_v58 }
 0x261   :  { %v793_v46 = vmul.f32 %v791_v47, %v2790_v56  ;;  %v798_v63 = vmul.f32 %v790_v18, %v2784_v51  ;;  %v799_v45 = vmul.f32 %v788_v17, %v2793_v57  ;;  %2315 = vmatpush1.bf16.msra.mxu0 %v2314_v14  ;;  %2349 = vmatprep.subr.bf16.mxu1 %v2348_v62 }
 0x262   :  { %804 = vst [vmem:[#allocation2 + $0x98] sm:$0xff] %v796_v23  ;;  %v814_v30 = vpop.permute.xlu0 %813  ;;  %v784_v16 = vpop.permute.xlu1 %783  ;;  %2351 = vmatpush1.bf16.msra.mxu1 %v2350_v28 }
 0x263   :  { %801 = vst [vmem:[#allocation2 + $0x80] sm:$0xff] %v793_v46  ;;  %806 = vst [vmem:[#allocation2 + $0xa8] sm:$0xff] %v798_v63  ;;  %v2316_v4 = vpack.c.bf16 %v798_v63, %v794_v44  ;;  %v827_v5 = vsel %vm252_vm4, %v814_v30, %v3175_v54  ;;  %v829_v35 = vsel %vm252_vm4, %v3171_v7, %v814_v30 }
 0x264   :  { %807 = vst [vmem:[#allocation2 + $0xb0] sm:$0xff] %v799_v45  ;;  %v786_v8 = vsel %vm210_vm3, %v3173_v53, %v784_v16  ;;  %v792_v21 = vsel %vm210_vm3, %v784_v16, %v3169_v6  ;;  %v834_v22 = vmul.f32 %v829_v35, %v2810_v9  ;;  %v835_v44 = vmul.f32 %v827_v5, %v2821_v36 }
 0x265   :  { %v797_v24 = vmul.f32 %v792_v21, %v2790_v56  ;;  %v800_v32 = vmul.f32 %v786_v8, %v2796_v58  ;;  %2317 = vmatprep.subr.bf16.mxu0 %v2316_v4  ;;  %v2354_v62 = vpack.c.bf16 %v799_v45, %v3282_v42 }
 0x266   :  { %842 = vst [vmem:[#allocation2 + $0xc8] sm:$0xff] %v834_v22  ;;  %843 = vst [vmem:[#allocation2 + $0xd0] sm:$0xff] %v835_v44  ;;  %v822_v43 = vpop.permute.xlu0 %821  ;;  %v816_v12 = vpop.permute.xlu1 %815 }
 0x267   :  { %805 = vst [vmem:[#allocation2 + $0xa0] sm:$0xff] %v797_v24  ;;  %808 = vst [vmem:[#allocation2 + $0xb8] sm:$0xff] %v800_v32  ;;  %v2318_v53 = vpack.c.bf16 %v797_v24, %v793_v46  ;;  %v2352_v14 = vpack.c.bf16 %v800_v32, %v796_v23  ;;  %v825_v6 = vsel %vm252_vm4, %v3175_v54, %v822_v43 }
 0x268   :  { %v831_v28 = vsel %vm252_vm4, %v822_v43, %v3171_v7  ;;  %v828_v2 = vsel %vm252_vm4, %v816_v12, %v3181_v1  ;;  %v830_v47 = vsel %vm252_vm4, %v3177_v10, %v816_v12  ;;  %v836_v42 = vmul.f32 %v825_v6, %v2825_v37 }
 0x269   :  { %v833_v17 = vmul.f32 %v831_v28, %v2816_v33  ;;  %v838_v18 = vmul.f32 %v830_v47, %v2810_v9  ;;  %v839_v54 = vmul.f32 %v828_v2, %v2821_v36  ;;  %2319 = vmatpush1.bf16.msra.mxu0 %v2318_v53  ;;  %2353 = vmatprep.subr.bf16.mxu1 %v2352_v14 }
 0x26a   :  { %844 = vst [vmem:[#allocation2 + $0xd8] sm:$0xff] %v836_v42  ;;  %v862_v7 = vpop.permute.xlu0 %861  ;;  %v824_v46 = vpop.permute.xlu1 %823  ;;  %2355 = vmatpush1.bf16.msra.mxu1 %v2354_v62 }
 0x26b   :  { %841 = vst [vmem:[#allocation2 + $0xc0] sm:$0xff] %v833_v17  ;;  %846 = vst [vmem:[#allocation2 + $0xe8] sm:$0xff] %v838_v18  ;;  %v2320_v23 = vpack.c.bf16 %v838_v18, %v834_v22  ;;  %v826_v63 = vsel %vm252_vm4, %v3181_v1, %v824_v46  ;;  %v832_v45 = vsel %vm252_vm4, %v824_v46, %v3177_v10 }
 0x26c   :  { %847 = vst [vmem:[#allocation2 + $0xf0] sm:$0xff] %v839_v54  ;;  %v837_v30 = vmul.f32 %v832_v45, %v2816_v33  ;;  %v840_v16 = vmul.f32 %v826_v63, %v2825_v37  ;;  %v875_v4 = vsel %vm298_vm5, %v862_v7, %v3183_v0  ;;  %v2324_v22 = vpack.c.bf16 %v2996_v59, %v2982_v31  ;;  %v4270_v63 = vld [vmem:[#allocation22_spill] sm:$0xff] }
 0x26d   :  { %2321 = vmatprep.subr.bf16.mxu0 %v2320_v23  ;;  %v877_v24 = vsel %vm298_vm5, %v3179_v3, %v862_v7  ;;  %v882_v32 = vmul.f32 %v875_v4, %v2855_v60  ;;  %v2358_v12 = vpack.c.bf16 %v839_v54, %v835_v44  ;;  %v2360_v31 = vpack.c.bf16 %v2998_v34, %v2984_v39  ;;  %v4272_v4 = vld [vmem:[#allocation7_spill] sm:$0xff] }
 0x26e   :  { %845 = vst [vmem:[#allocation2 + $0xe0] sm:$0xff] %v837_v30  ;;  %848 = vst [vmem:[#allocation2 + $0xf8] sm:$0xff] %v840_v16  ;;  %v870_v5 = vpop.permute.xlu0 %869  ;;  %v864_v35 = vpop.permute.xlu1 %863  ;;  %v2322_v8 = vpack.c.bf16 %v837_v30, %v833_v17  ;;  %v2356_v21 = vpack.c.bf16 %v840_v16, %v836_v42  ;;  %v881_v44 = vmul.f32 %v877_v24, %v2839_v49  ;;  %v4271_v30 = vld [vmem:[#allocation5_spill] sm:$0xff] }
 0x26f   :  { %v876_v1 = vsel %vm298_vm5, %v864_v35, %v3189_v26  ;;  %v878_v10 = vsel %vm298_vm5, %v3185_v50, %v864_v35  ;;  %v873_v53 = vsel %vm298_vm5, %v3183_v0, %v870_v5  ;;  %v879_v14 = vsel %vm298_vm5, %v870_v5, %v3179_v3 }
 0x270   :  { %v886_v43 = vmul.f32 %v876_v1, %v2855_v60  ;;  %2323 = vmatpush1.bf16.msra.mxu0 %v2322_v8  ;;  %2357 = vmatprep.subr.bf16.mxu1 %v2356_v21  ;;  %v885_v59 = vmul.f32 %v878_v10, %v2839_v49  ;;  %v883_v2 = vmul.f32 %v873_v53, %v2859_v61 }
 0x271   :  { %2325 = vmatprep.subr.bf16.mxu0 %v2324_v22  ;;  %2359 = vmatpush1.bf16.msra.mxu1 %v2358_v12  ;;  %v884_v39 = vmul.f32 %v879_v14, %v2850_v55  ;;  %v4267_v17 = vpack.c.bf16 %v2992_v48, %v2978_v27  ;;  %v4268_v54 = vpack.c.bf16 %v2994_v52, %v2980_v29  ;;  %v4269_v27 = vld [vmem:[#allocation24_spill] sm:$0xff]  ;;  %v4274_v12 = vld [vmem:[#allocation6_spill] sm:$0xff] }
 0x272   :  { %v902_v62 = vpop.permute.xlu0 %901  ;;  %v872_v6 = vpop.permute.xlu1 %871  ;;  %v2328_v28 = vpack.c.bf16 %v886_v43, %v882_v32  ;;  %2361 = vmatprep.subr.bf16.mxu1 %v2360_v31  ;;  %v2330_v7 = vpack.c.bf16 %v885_v59, %v881_v44  ;;  %v4273_v43 = vld [vmem:[#allocation8_spill] sm:$0xff]  ;;  %v4275_v31 = vld [vmem:[#allocation25_spill] sm:$0xff] }
 0x273   :  { %v874_v0 = vsel %vm298_vm5, %v3189_v26, %v872_v6  ;;  %v880_v3 = vsel %vm298_vm5, %v872_v6, %v3185_v50  ;;  %v915_v26 = vsel %vm340_vm6, %v902_v62, %v3191_v13  ;;  %v917_v50 = vsel %vm340_vm6, %v3187_v15, %v902_v62  ;;  %v4276_v62 = vld [vmem:[#allocation23_spill] sm:$0xff] }
 0x274   :  { %v887_v34 = vmul.f32 %v874_v0, %v2859_v61  ;;  %v888_v47 = vmul.f32 %v880_v3, %v2850_v55  ;;  %2327 = vmatpush1.bf16.msra.mxu0 %v4267_v17  ;;  %v921_v16 = vmul.f32 %v917_v50, %v4271_v30  ;;  %v922_v5 = vmul.f32 %v915_v26, %v4272_v4  ;;  %v4279_v17 = vld [vmem:[#allocation9_spill] sm:$0xff]  ;;  %v4280_v50 = vld [vmem:[#allocation11_spill] sm:$0xff] }
 0x275   :  { %2329 = vmatprep.subr.bf16.mxu0 %v2328_v28  ;;  %2363 = vmatpush1.bf16.msra.mxu1 %v4268_v54 }
 0x276   :  { %v910_v42 = vpop.permute.xlu0 %909  ;;  %v904_v18 = vpop.permute.xlu1 %903  ;;  %v2364_v46 = vpack.c.bf16 %v888_v47, %v884_v39  ;;  %v2366_v23 = vpack.c.bf16 %v887_v34, %v883_v2  ;;  %v4277_v2 = vld [vmem:[#allocation28_spill] sm:$0xff]  ;;  %v4278_v34 = vld [vmem:[#allocation26_spill] sm:$0xff] }
 0x277   :  { %v916_v48 = vsel %vm340_vm6, %v904_v18, %v4269_v27  ;;  %v918_v45 = vsel %vm340_vm6, %v4270_v63, %v904_v18  ;;  %v913_v52 = vsel %vm340_vm6, %v3191_v13, %v910_v42  ;;  %v919_v8 = vsel %vm340_vm6, %v910_v42, %v3187_v15 }
 0x278   :  { %v925_v35 = vmul.f32 %v918_v45, %v4271_v30  ;;  %v926_v29 = vmul.f32 %v916_v48, %v4272_v4  ;;  %2331 = vmatpush1.bf16.msra.mxu0 %v2330_v7  ;;  %2365 = vmatprep.subr.bf16.mxu1 %v2364_v46  ;;  %v923_v13 = vmul.f32 %v913_v52, %v4273_v43 }
 0x279   :  { %2367 = vmatpush1.bf16.msra.mxu1 %v2366_v23  ;;  %v924_v53 = vmul.f32 %v919_v8, %v4274_v12 }
 0x27a   :  { %v942_v21 = vpop.permute.xlu0 %941  ;;  %v912_v1 = vpop.permute.xlu1 %911  ;;  %v2332_v10 = vpack.c.bf16 %v926_v29, %v922_v5  ;;  %v2334_v22 = vpack.c.bf16 %v925_v35, %v921_v16  ;;  %v4281_v5 = vld [vmem:[#allocation12_spill] sm:$0xff]  ;;  %v4282_v29 = vld [vmem:[#allocation10_spill] sm:$0xff] }
 0x27b   :  { %v914_v24 = vsel %vm340_vm6, %v4269_v27, %v912_v1  ;;  %v920_v32 = vsel %vm340_vm6, %v912_v1, %v4270_v63  ;;  %v955_v59 = vsel %vm382_vm7, %v942_v21, %v4275_v31  ;;  %v957_v6 = vsel %vm382_vm7, %v4276_v62, %v942_v21  ;;  %v4283_v1 = vld [vmem:[#allocation29_spill] sm:$0xff] }
 0x27c   :  { %v927_v15 = vmul.f32 %v914_v24, %v4273_v43  ;;  %v928_v14 = vmul.f32 %v920_v32, %v4274_v12  ;;  %2333 = vmatprep.subr.bf16.mxu0 %v2332_v10  ;;  %v961_v26 = vmul.f32 %v957_v6, %v4279_v17  ;;  %v962_v42 = vmul.f32 %v955_v59, %v4280_v50  ;;  %v4286_v59 = vld [vmem:[#allocation30_spill] sm:$0xff]  ;;  %v4287_v6 = vld [vmem:[#allocation13_spill] sm:$0xff] }
 0x27d   :  { %2335 = vmatpush1.bf16.msra.mxu0 %v2334_v22  ;;  %v4284_v22 = vld [vmem:[#allocation27_spill] sm:$0xff] }
 0x27e   :  { %v950_v28 = vpop.permute.xlu0 %949  ;;  %v944_v44 = vpop.permute.xlu1 %943  ;;  %v2368_v0 = vpack.c.bf16 %v928_v14, %v924_v53  ;;  %v2370_v3 = vpack.c.bf16 %v927_v15, %v923_v13  ;;  %v4285_v14 = vld [vmem:[#allocation31_spill] sm:$0xff] }
 0x27f   :  { %v956_v39 = vsel %vm382_vm7, %v944_v44, %v4277_v2  ;;  %v958_v47 = vsel %vm382_vm7, %v4278_v34, %v944_v44  ;;  %v953_v7 = vsel %vm382_vm7, %v4275_v31, %v950_v28  ;;  %v959_v46 = vsel %vm382_vm7, %v950_v28, %v4276_v62  ;;  %v4288_v44 = vld [vmem:[#allocation15_spill] sm:$0xff] }
 0x280   :  { %v965_v18 = vmul.f32 %v958_v47, %v4279_v17  ;;  %v966_v54 = vmul.f32 %v956_v39, %v4280_v50  ;;  %2369 = vmatprep.subr.bf16.mxu1 %v2368_v0  ;;  %v963_v35 = vmul.f32 %v953_v7, %v4281_v5  ;;  %v964_v52 = vmul.f32 %v959_v46, %v4282_v29  ;;  %v4289_v7 = vld [vmem:[#allocation16_spill] sm:$0xff] }
 0x281   :  { %2371 = vmatpush1.bf16.msra.mxu1 %v2370_v3 }
 0x282   :  { %v982_v23 = vpop.permute.xlu0 %981  ;;  %v952_v27 = vpop.permute.xlu1 %951  ;;  %v2336_v48 = vpack.c.bf16 %v966_v54, %v962_v42  ;;  %v2338_v63 = vpack.c.bf16 %v965_v18, %v961_v26 }
 0x283   :  { %v954_v45 = vsel %vm382_vm7, %v4277_v2, %v952_v27  ;;  %v960_v16 = vsel %vm382_vm7, %v952_v27, %v4278_v34  ;;  %v995_v10 = vsel %vm424_vm8, %v982_v23, %v4283_v1  ;;  %v997_v24 = vsel %vm424_vm8, %v4284_v22, %v982_v23  ;;  %v4290_v23 = vld [vmem:[#allocation14_spill] sm:$0xff] }
 0x284   :  { %v967_v8 = vmul.f32 %v954_v45, %v4281_v5  ;;  %v968_v21 = vmul.f32 %v960_v16, %v4282_v29  ;;  %2337 = vmatprep.subr.bf16.mxu0 %v2336_v48  ;;  %v1001_v28 = vmul.f32 %v997_v24, %v4287_v6  ;;  %v1002_v0 = vmul.f32 %v995_v10, %v4288_v44  ;;  %v4291_v45 = vld [vmem:[#allocation18_spill] sm:$0xff]  ;;  %v4295_v10 = vld [vmem:[#allocation21_spill] sm:$0xff] }
 0x285   :  { %2339 = vmatpush1.bf16.msra.mxu0 %v2338_v63 }
 0x286   :  { %v990_v32 = vpop.permute.xlu0 %989  ;;  %v984_v13 = vpop.permute.xlu1 %983  ;;  %v2372_v53 = vpack.c.bf16 %v968_v21, %v964_v52  ;;  %v2374_v15 = vpack.c.bf16 %v967_v8, %v963_v35  ;;  %v1020_v52 = vld [vmem:[%s4165_s3] sm:$0x3f]  ;;  %v4293_v21 = vld [vmem:[#allocation20_spill] sm:$0xff] }
 0x287   :  { %v996_v31 = vsel %vm424_vm8, %v984_v13, %v4285_v14  ;;  %v998_v62 = vsel %vm424_vm8, %v4286_v59, %v984_v13  ;;  %v993_v39 = vsel %vm424_vm8, %v4283_v1, %v990_v32  ;;  %v999_v34 = vsel %vm424_vm8, %v990_v32, %v4284_v22  ;;  %v4292_v8 = vld [vmem:[#allocation19_spill] sm:$0xff] }
 0x288   :  { %v1005_v3 = vmul.f32 %v998_v62, %v4287_v6  ;;  %v1006_v2 = vmul.f32 %v996_v31, %v4288_v44  ;;  %2373 = vmatprep.subr.bf16.mxu1 %v2372_v53  ;;  %v1003_v46 = vmul.f32 %v993_v39, %v4289_v7  ;;  %v1004_v27 = vmul.f32 %v999_v34, %v4290_v23 }
 0x289   :  { %2375 = vmatpush1.bf16.msra.mxu1 %v2374_v15  ;;  %v4294_v1 = vmov 0.0  }
 0x28a   :  { %v992_v47 = vpop.permute.xlu1 %991  ;;  %v2340_v26 = vpack.c.bf16 %v1006_v2, %v1002_v0  ;;  %v2342_v42 = vpack.c.bf16 %v1005_v3, %v1001_v28  ;;  %v4296_v0 = vld [vmem:[#allocation3_spill] sm:$0xff] }
 0x28b   :  { %v994_v18 = vsel %vm424_vm8, %v4285_v14, %v992_v47  ;;  %v1000_v54 = vsel %vm424_vm8, %v992_v47, %v4286_v59  ;;  %v4297_v47 = vld [vmem:[#allocation4_spill] sm:$0xff] }
 0x28c   :  { %v1007_v48 = vmul.f32 %v994_v18, %v4289_v7  ;;  %v1008_v63 = vmul.f32 %v1000_v54, %v4290_v23  ;;  %2341 = vmatprep.subr.bf16.mxu0 %v2340_v26 }
 0x28d   :  { %2343 = vmatpush1.bf16.msra.mxu0 %v2342_v42 }
 0x28e   :  { %2244 = vmatprep.subr.msk.mxu0 %vm514_vm9, %v4291_v45  ;;  %v2376_v16 = vpack.c.bf16 %v1008_v63, %v1004_v27  ;;  %v2378_v35 = vpack.c.bf16 %v1007_v48, %v1003_v46 }
 0x290   :  { %2377 = vmatprep.subr.bf16.mxu1 %v2376_v16 }
 0x291   :  { %2245 = vmatpush1.msk.msra.mxu0 %vm514_vm9, %v4292_v8  ;;  %2379 = vmatpush1.bf16.msra.mxu1 %v2378_v35 }
 0x292   :  { %1179 = vmatmul.mubr.f32.vlgmr.msra.gmra.mrb[4].mxu0 %v1020_v52  ;;  %2247 = vmatprep.subr.msk.mxu1 %vm514_vm9, %v4293_v21 }
 0x293   :  { %1554 = vmatprep.mubr.f32.mxu0 %v4294_v1 }
 0x295   :  { %2248 = vmatpush1.msk.msra.mxu1 %vm514_vm9, %v4295_v10 }
 0x296   :  { %1250 = vmatmul.mubr.f32.vlgmr.msra.gmra.mrb[4].mxu1 %v1020_v52 }
 0x297   :  { %1631 = vmatprep.mubr.f32.mxu1 %v4294_v1 }
 0x365   :  { %v1180_v22 = vpop.f32.mrb[4].mxu0 }
 0x366   :  { %2507 = vtanh.f32 %v1180_v22  ;;  %v1182_v24 = vpop.f32.mrb[5].mxu0 }
 0x367   :  { %2509 = vtanh.f32 %v1182_v24 }
 0x369   :  { %v1251_v32 = vpop.f32.mrb[4].mxu1 }
 0x36a   :  { %2511 = vtanh.f32 %v1251_v32  ;;  %v1253_v13 = vpop.f32.mrb[5].mxu1 }
 0x36b   :  { %2513 = vtanh.f32 %v1253_v13 }
 0x370   :  { %v2508_v53 = vpop.eup %2507 }
 0x371   :  { %v2510_v15 = vpop.eup %2509  ;;  %1260 = vst [vmem:[%s4166_s6] sm:$0x3f] %v2508_v53  ;;  %1344 = vst [vmem:[#allocation2 + $0x80] sm:$0x3f] %v2508_v53  ;;  %1264 = vrot.lane.b32.xlu0 %v2508_v53, %s2524_s30 }
 0x372   :  { %1261 = vst [vmem:[%s4166_s6 + $0x8] sm:$0x3f] %v2510_v15  ;;  %1345 = vst [vmem:[#allocation2 + $0x88] sm:$0x3f] %v2510_v15  ;;  %1266 = vrot.lane.b32.xlu1 %v2510_v15, %s2524_s30 }
 0x374   :  { %v2512_v14 = vpop.eup %2511 }
 0x375   :  { %v2514_v31 = vpop.eup %2513  ;;  %1262 = vst [vmem:[%s4166_s6 + $0x10] sm:$0x3f] %v2512_v14  ;;  %1346 = vst [vmem:[#allocation2 + $0x90] sm:$0x3f] %v2512_v14  ;;  %1268 = vrot.lane.b32.xlu0 %v2512_v14, %s2524_s30 }
 0x376   :  { %1263 = vst [vmem:[%s4166_s6 + $0x18] sm:$0x3f] %v2514_v31  ;;  %1347 = vst [vmem:[#allocation2 + $0x98] sm:$0x3f] %v2514_v31  ;;  %1270 = vrot.lane.b32.xlu1 %v2514_v31, %s2524_s30 }
 0x379   :  { %1284 = vrot.lane.b32.xlu0 %v2508_v53, %s2525_s10 }
 0x37a   :  { %1286 = vrot.lane.b32.xlu1 %v2510_v15, %s2525_s10 }
 0x37d   :  { %1288 = vrot.lane.b32.xlu0 %v2512_v14, %s2525_s10 }
 0x37e   :  { %1290 = vrot.lane.b32.xlu1 %v2514_v31, %s2525_s10 }
 0x381   :  { %1304 = vrot.lane.b32.xlu0 %v2508_v53, %s2526_s1 }
 0x382   :  { %1306 = vrot.lane.b32.xlu1 %v2510_v15, %s2526_s1 }
 0x385   :  { %1308 = vrot.lane.b32.xlu0 %v2512_v14, %s2526_s1 }
 0x386   :  { %1310 = vrot.lane.b32.xlu1 %v2514_v31, %s2526_s1 }
 0x389   :  { %1324 = vrot.lane.b32.xlu0 %v2508_v53, %s2527_s11 }
 0x38a   :  { %1326 = vrot.lane.b32.xlu1 %v2510_v15, %s2527_s11 }
 0x38d   :  { %1328 = vrot.lane.b32.xlu0 %v2512_v14, %s2527_s11 }
 0x38e   :  { %1330 = vrot.lane.b32.xlu1 %v2514_v31, %s2527_s11 }
 0x391   :  { %1348 = vrot.lane.b32.xlu0 %v2508_v53, %s2528_s12 }
 0x392   :  { %1350 = vrot.lane.b32.xlu1 %v2510_v15, %s2528_s12 }
 0x395   :  { %1352 = vrot.lane.b32.xlu0 %v2512_v14, %s2528_s12 }
 0x396   :  { %1354 = vrot.lane.b32.xlu1 %v2514_v31, %s2528_s12 }
 0x399   :  { %1368 = vrot.lane.b32.xlu0 %v2508_v53, %s2529_s13 }
 0x39a   :  { %1370 = vrot.lane.b32.xlu1 %v2510_v15, %s2529_s13 }
 0x39d   :  { %1372 = vrot.lane.b32.xlu0 %v2512_v14, %s2529_s13 }
 0x39e   :  { %1374 = vrot.lane.b32.xlu1 %v2514_v31, %s2529_s13 }
 0x3a1   :  { %1388 = vrot.lane.b32.xlu0 %v2508_v53, %s2531_s14 }
 0x3a2   :  { %1390 = vrot.lane.b32.xlu1 %v2510_v15, %s2531_s14 }
 0x3a5   :  { %1392 = vrot.lane.b32.xlu0 %v2512_v14, %s2531_s14 }
 0x3a6   :  { %1394 = vrot.lane.b32.xlu1 %v2514_v31, %s2531_s14 }
 0x3a9   :  { %1408 = vrot.lane.b32.xlu0 %v2508_v53, %s2532_s15 }
 0x3aa   :  { %1410 = vrot.lane.b32.xlu1 %v2510_v15, %s2532_s15 }
 0x3ad   :  { %1412 = vrot.lane.b32.xlu0 %v2512_v14, %s2532_s15 }
 0x3ae   :  { %1414 = vrot.lane.b32.xlu1 %v2514_v31, %s2532_s15 }
 0x3e3   :  { %v1265_v59 = vpop.permute.xlu0 %1264 }
 0x3e4   :  { %v1267_v62 = vpop.permute.xlu1 %1266 }
 0x3e5   :  { %v1274_v28 = vsel %vm126_vm1, %v1265_v59, %v1267_v62 }
 0x3e6   :  { %v1277_v3 = vmul.f32 %v1274_v28, %v4296_v0 }
 0x3e7   :  { %v1269_v2 = vpop.permute.xlu0 %1268 }
 0x3e8   :  { %1281 = vst [vmem:[#allocation2 + $0x8] sm:$0x3f] %v1277_v3  ;;  %v1273_v39 = vsel %vm126_vm1, %v1267_v62, %v1269_v2  ;;  %v1271_v34 = vpop.permute.xlu1 %1270 }
 0x3e9   :  { %v1278_v26 = vmul.f32 %v1273_v39, %v4297_v47  ;;  %v1272_v42 = vsel %vm126_vm1, %v1269_v2, %v1271_v34  ;;  %v1275_v18 = vsel %vm126_vm1, %v1271_v34, %v1265_v59 }
 0x3ea   :  { %v1276_v54 = vmul.f32 %v1275_v18, %v2728_v19  ;;  %v1279_v46 = vmul.f32 %v1272_v42, %v2731_v20 }
 0x3eb   :  { %1282 = vst [vmem:[#allocation2 + $0x10] sm:$0x3f] %v1278_v26  ;;  %v1285_v27 = vpop.permute.xlu0 %1284 }
 0x3ec   :  { %1280 = vst [vmem:[#allocation2] sm:$0x3f] %v1276_v54  ;;  %1283 = vst [vmem:[#allocation2 + $0x18] sm:$0x3f] %v1279_v46  ;;  %v1287_v48 = vpop.permute.xlu1 %1286 }
 0x3ed   :  { %v1294_v63 = vsel %vm168_vm2, %v1285_v27, %v1287_v48 }
 0x3ee   :  { %v1297_v45 = vmul.f32 %v1294_v63, %v2741_v25 }
 0x3ef   :  { %v1289_v16 = vpop.permute.xlu0 %1288  ;;  %v1433_v31 = vld [vmem:[#allocation2 + $0x8] sm:$0xff] }
 0x3f0   :  { %1301 = vst [vmem:[#allocation2 + $0x28] sm:$0x3f] %v1297_v45  ;;  %v1293_v35 = vsel %vm168_vm2, %v1287_v48, %v1289_v16  ;;  %v1291_v52 = vpop.permute.xlu1 %1290 }
 0x3f1   :  { %v1298_v8 = vmul.f32 %v1293_v35, %v2767_v40  ;;  %v1292_v21 = vsel %vm168_vm2, %v1289_v16, %v1291_v52  ;;  %v1295_v10 = vsel %vm168_vm2, %v1291_v52, %v1285_v27 }
 0x3f2   :  { %v1296_v22 = vmul.f32 %v1295_v10, %v2763_v38  ;;  %v1299_v24 = vmul.f32 %v1292_v21, %v2770_v41  ;;  %v1434_v52 = vld [vmem:[#allocation2 + $0x10] sm:$0xff] }
 0x3f3   :  { %1302 = vst [vmem:[#allocation2 + $0x30] sm:$0x3f] %v1298_v8  ;;  %v1305_v32 = vpop.permute.xlu0 %1304  ;;  %v1432_v18 = vld [vmem:[#allocation2] sm:$0xff]  ;;  %v1435_v48 = vld [vmem:[#allocation2 + $0x18] sm:$0xff] }
 0x3f4   :  { %1300 = vst [vmem:[#allocation2 + $0x20] sm:$0x3f] %v1296_v22  ;;  %1303 = vst [vmem:[#allocation2 + $0x38] sm:$0x3f] %v1299_v24  ;;  %v1307_v13 = vpop.permute.xlu1 %1306 }
 0x3f5   :  { %v1314_v53 = vsel %vm210_vm3, %v1305_v32, %v1307_v13 }
 0x3f6   :  { %v1317_v15 = vmul.f32 %v1314_v53, %v2784_v51 }
 0x3f7   :  { %v1309_v14 = vpop.permute.xlu0 %1308  ;;  %v1437_v59 = vld [vmem:[#allocation2 + $0x28] sm:$0xff] }
 0x3f8   :  { %1321 = vst [vmem:[#allocation2 + $0x48] sm:$0x3f] %v1317_v15  ;;  %v1313_v62 = vsel %vm210_vm3, %v1307_v13, %v1309_v14  ;;  %v1311_v28 = vpop.permute.xlu1 %1310  ;;  %v2380_v3 = vpack.c.bf16 %v1437_v59, %v1433_v31 }
 0x3f9   :  { %v1318_v2 = vmul.f32 %v1313_v62, %v2793_v57  ;;  %v1312_v39 = vsel %vm210_vm3, %v1309_v14, %v1311_v28  ;;  %v1315_v34 = vsel %vm210_vm3, %v1311_v28, %v1305_v32 }
 0x3fa   :  { %v1316_v26 = vmul.f32 %v1315_v34, %v2790_v56  ;;  %v1319_v42 = vmul.f32 %v1312_v39, %v2796_v58  ;;  %2381 = vmatprep.subr.bf16.mxu0 %v2380_v3  ;;  %v1438_v54 = vld [vmem:[#allocation2 + $0x30] sm:$0xff] }
 0x3fb   :  { %1322 = vst [vmem:[#allocation2 + $0x50] sm:$0x3f] %v1318_v2  ;;  %v1325_v46 = vpop.permute.xlu0 %1324  ;;  %v1436_v27 = vld [vmem:[#allocation2 + $0x20] sm:$0xff]  ;;  %v1439_v63 = vld [vmem:[#allocation2 + $0x38] sm:$0xff]  ;;  %v2404_v21 = vpack.c.bf16 %v1438_v54, %v1434_v52 }
 0x3fc   :  { %1320 = vst [vmem:[#allocation2 + $0x40] sm:$0x3f] %v1316_v26  ;;  %1323 = vst [vmem:[#allocation2 + $0x58] sm:$0x3f] %v1319_v42  ;;  %v1327_v45 = vpop.permute.xlu1 %1326  ;;  %v2382_v16 = vpack.c.bf16 %v1436_v27, %v1432_v18  ;;  %v2402_v35 = vpack.c.bf16 %v1439_v63, %v1435_v48 }
 0x3fd   :  { %v1334_v8 = vsel %vm252_vm4, %v1325_v46, %v1327_v45 }
 0x3fe   :  { %v1337_v10 = vmul.f32 %v1334_v8, %v2810_v9  ;;  %2383 = vmatpush1.bf16.msra.mxu0 %v2382_v16  ;;  %2403 = vmatprep.subr.bf16.mxu1 %v2402_v35 }
 0x3ff   :  { %v1329_v22 = vpop.permute.xlu0 %1328  ;;  %2405 = vmatpush1.bf16.msra.mxu1 %v2404_v21  ;;  %v1441_v39 = vld [vmem:[#allocation2 + $0x48] sm:$0xff] }
 0x400   :  { %1341 = vst [vmem:[#allocation2 + $0x68] sm:$0x3f] %v1337_v10  ;;  %v1333_v24 = vsel %vm252_vm4, %v1327_v45, %v1329_v22  ;;  %v1331_v32 = vpop.permute.xlu1 %1330 }
 0x401   :  { %v1338_v13 = vmul.f32 %v1333_v24, %v2821_v36  ;;  %v1332_v53 = vsel %vm252_vm4, %v1329_v22, %v1331_v32  ;;  %v1335_v15 = vsel %vm252_vm4, %v1331_v32, %v1325_v46 }
 0x402   :  { %v1336_v14 = vmul.f32 %v1335_v15, %v2816_v33  ;;  %v1339_v31 = vmul.f32 %v1332_v53, %v2825_v37  ;;  %v1442_v32 = vld [vmem:[#allocation2 + $0x50] sm:$0xff] }
 0x403   :  { %1342 = vst [vmem:[#allocation2 + $0x70] sm:$0x3f] %v1338_v13  ;;  %v1349_v59 = vpop.permute.xlu0 %1348  ;;  %v1440_v45 = vld [vmem:[#allocation2 + $0x40] sm:$0xff]  ;;  %v1443_v8 = vld [vmem:[#allocation2 + $0x58] sm:$0xff] }
 0x404   :  { %1340 = vst [vmem:[#allocation2 + $0x60] sm:$0x3f] %v1336_v14  ;;  %1343 = vst [vmem:[#allocation2 + $0x78] sm:$0x3f] %v1339_v31  ;;  %v1351_v62 = vpop.permute.xlu1 %1350 }
 0x405   :  { %v1358_v28 = vsel %vm298_vm5, %v1349_v59, %v1351_v62 }
 0x406   :  { %v1360_v3 = vmul.f32 %v1358_v28, %v2839_v49 }
 0x407   :  { %v1353_v2 = vpop.permute.xlu0 %1352  ;;  %v1445_v34 = vld [vmem:[#allocation2 + $0x68] sm:$0xff] }
 0x408   :  { %1364 = vst [vmem:[#allocation2 + $0xa0] sm:$0x3f] %v1360_v3  ;;  %v1357_v26 = vsel %vm298_vm5, %v1351_v62, %v1353_v2  ;;  %v1355_v42 = vpop.permute.xlu1 %1354  ;;  %v2384_v18 = vpack.c.bf16 %v1445_v34, %v1441_v39 }
 0x409   :  { %v1361_v54 = vmul.f32 %v1357_v26, %v2855_v60  ;;  %v1356_v46 = vsel %vm298_vm5, %v1353_v2, %v1355_v42  ;;  %v1359_v27 = vsel %vm298_vm5, %v1355_v42, %v1349_v59  ;;  %v1448_v2 = vld [vmem:[#allocation2 + $0x80] sm:$0xff]  ;;  %v1449_v42 = vld [vmem:[#allocation2 + $0x88] sm:$0xff] }
 0x40a   :  { %v1362_v48 = vmul.f32 %v1356_v46, %v2859_v61  ;;  %v1363_v63 = vmul.f32 %v1359_v27, %v2850_v55  ;;  %2385 = vmatprep.subr.bf16.mxu0 %v2384_v18  ;;  %v1446_v16 = vld [vmem:[#allocation2 + $0x70] sm:$0xff] }
 0x40b   :  { %1365 = vst [vmem:[#allocation2 + $0xa8] sm:$0x3f] %v1361_v54  ;;  %v1369_v35 = vpop.permute.xlu0 %1368  ;;  %v1444_v52 = vld [vmem:[#allocation2 + $0x60] sm:$0xff]  ;;  %v1447_v21 = vld [vmem:[#allocation2 + $0x78] sm:$0xff]  ;;  %v2408_v53 = vpack.c.bf16 %v1446_v16, %v1442_v32  ;;  %v1450_v54 = vld [vmem:[#allocation2 + $0x90] sm:$0xff] }
 0x40c   :  { %1366 = vst [vmem:[#allocation2 + $0xb0] sm:$0x3f] %v1362_v48  ;;  %1367 = vst [vmem:[#allocation2 + $0xb8] sm:$0x3f] %v1363_v63  ;;  %v1371_v10 = vpop.permute.xlu1 %1370  ;;  %v2386_v22 = vpack.c.bf16 %v1444_v52, %v1440_v45  ;;  %v2406_v24 = vpack.c.bf16 %v1447_v21, %v1443_v8  ;;  %v1451_v48 = vld [vmem:[#allocation2 + $0x98] sm:$0xff] }
 0x40d   :  { %v1378_v13 = vsel %vm340_vm6, %v1369_v35, %v1371_v10 }
 0x40e   :  { %v1380_v15 = vmul.f32 %v1378_v13, %v4271_v30  ;;  %2387 = vmatpush1.bf16.msra.mxu0 %v2386_v22  ;;  %2407 = vmatprep.subr.bf16.mxu1 %v2406_v24 }
 0x40f   :  { %v1373_v14 = vpop.permute.xlu0 %1372  ;;  %2409 = vmatpush1.bf16.msra.mxu1 %v2408_v53  ;;  %v1452_v39 = vld [vmem:[#allocation2 + $0xa0] sm:$0xff] }
 0x410   :  { %1384 = vst [vmem:[#allocation2 + $0xc0] sm:$0x3f] %v1380_v15  ;;  %v1377_v31 = vsel %vm340_vm6, %v1371_v10, %v1373_v14  ;;  %v1375_v59 = vpop.permute.xlu1 %1374  ;;  %v2390_v52 = vpack.c.bf16 %v1452_v39, %v1448_v2 }
 0x411   :  { %v1381_v62 = vmul.f32 %v1377_v31, %v4272_v4  ;;  %v1376_v28 = vsel %vm340_vm6, %v1373_v14, %v1375_v59  ;;  %v1379_v3 = vsel %vm340_vm6, %v1375_v59, %v1369_v35 }
 0x412   :  { %v1382_v34 = vmul.f32 %v1376_v28, %v4273_v43  ;;  %v1383_v26 = vmul.f32 %v1379_v3, %v4274_v12  ;;  %v1453_v18 = vld [vmem:[#allocation2 + $0xa8] sm:$0xff] }
 0x413   :  { %1385 = vst [vmem:[#allocation2 + $0xc8] sm:$0x3f] %v1381_v62  ;;  %v1389_v46 = vpop.permute.xlu0 %1388  ;;  %v2388_v27 = vpack.c.bf16 %v1453_v18, %v1449_v42  ;;  %v1455_v63 = vld [vmem:[#allocation2 + $0xb8] sm:$0xff]  ;;  %v1454_v45 = vld [vmem:[#allocation2 + $0xb0] sm:$0xff] }
 0x414   :  { %1386 = vst [vmem:[#allocation2 + $0xd0] sm:$0x3f] %v1382_v34  ;;  %1387 = vst [vmem:[#allocation2 + $0xd8] sm:$0x3f] %v1383_v26  ;;  %v1391_v16 = vpop.permute.xlu1 %1390  ;;  %v2410_v35 = vpack.c.bf16 %v1455_v63, %v1451_v48  ;;  %v2412_v8 = vpack.c.bf16 %v1454_v45, %v1450_v54 }
 0x415   :  { %v1398_v21 = vsel %vm382_vm7, %v1389_v46, %v1391_v16  ;;  %2389 = vmatprep.subr.bf16.mxu0 %v2388_v27 }
 0x416   :  { %v1400_v10 = vmul.f32 %v1398_v21, %v4279_v17  ;;  %2391 = vmatpush1.bf16.msra.mxu0 %v2390_v52  ;;  %2411 = vmatprep.subr.bf16.mxu1 %v2410_v35 }
 0x417   :  { %v1393_v22 = vpop.permute.xlu0 %1392  ;;  %2413 = vmatpush1.bf16.msra.mxu1 %v2412_v8  ;;  %v1456_v54 = vld [vmem:[#allocation2 + $0xc0] sm:$0xff] }
 0x418   :  { %1404 = vst [vmem:[#allocation2 + $0xe0] sm:$0x3f] %v1400_v10  ;;  %v1397_v24 = vsel %vm382_vm7, %v1391_v16, %v1393_v22  ;;  %v1395_v32 = vpop.permute.xlu1 %1394 }
 0x419   :  { %v1401_v13 = vmul.f32 %v1397_v24, %v4280_v50  ;;  %v1396_v53 = vsel %vm382_vm7, %v1393_v22, %v1395_v32  ;;  %v1399_v15 = vsel %vm382_vm7, %v1395_v32, %v1389_v46  ;;  %v1469_v32 = vld [vmem:[#allocation2 + $0x128] sm:$0x1] }
 0x41a   :  { %v1402_v14 = vmul.f32 %v1396_v53, %v4281_v5  ;;  %v1403_v31 = vmul.f32 %v1399_v15, %v4282_v29  ;;  %v1457_v63 = vld [vmem:[#allocation2 + $0xc8] sm:$0xff]  ;;  %v1471_v15 = vld [vmem:[#allocation2 + $0x138] sm:$0x1] }
 0x41b   :  { %1405 = vst [vmem:[#allocation2 + $0xe8] sm:$0x3f] %v1401_v13  ;;  %v1409_v59 = vpop.permute.xlu0 %1408  ;;  %v1459_v16 = vld [vmem:[#allocation2 + $0xd8] sm:$0xff]  ;;  %v1458_v8 = vld [vmem:[#allocation2 + $0xd0] sm:$0xff]  ;;  %v1468_v13 = vld [vmem:[#allocation2 + $0x120] sm:$0x1] }
 0x41c   :  { %1406 = vst [vmem:[#allocation2 + $0xf0] sm:$0x3f] %v1402_v14  ;;  %1407 = vst [vmem:[#allocation2 + $0xf8] sm:$0x3f] %v1403_v31  ;;  %v1411_v62 = vpop.permute.xlu1 %1410  ;;  %v1470_v14 = vld [vmem:[#allocation2 + $0x130] sm:$0x1] }
 0x41d   :  { %v1418_v28 = vsel %vm424_vm8, %v1409_v59, %v1411_v62 }
 0x41e   :  { %v1420_v3 = vmul.f32 %v1418_v28, %v4287_v6 }
 0x41f   :  { %v1413_v2 = vpop.permute.xlu0 %1412  ;;  %v1460_v46 = vld [vmem:[#allocation2 + $0xe0] sm:$0xff] }
 0x420   :  { %1424 = vst [vmem:[#allocation2 + $0x100] sm:$0x3f] %v1420_v3  ;;  %v1417_v39 = vsel %vm424_vm8, %v1411_v62, %v1413_v2  ;;  %v1415_v34 = vpop.permute.xlu1 %1414  ;;  %v2394_v10 = vpack.c.bf16 %v1460_v46, %v1456_v54 }
 0x421   :  { %v1421_v26 = vmul.f32 %v1417_v39, %v4288_v44  ;;  %v1416_v42 = vsel %vm424_vm8, %v1413_v2, %v1415_v34  ;;  %v1419_v18 = vsel %vm424_vm8, %v1415_v34, %v1409_v59 }
 0x422   :  { %v1422_v27 = vmul.f32 %v1416_v42, %v4289_v7  ;;  %v1423_v48 = vmul.f32 %v1419_v18, %v4290_v23  ;;  %v1461_v45 = vld [vmem:[#allocation2 + $0xe8] sm:$0xff] }
 0x423   :  { %1425 = vst [vmem:[#allocation2 + $0x108] sm:$0x3f] %v1421_v26  ;;  %v2392_v52 = vpack.c.bf16 %v1461_v45, %v1457_v63  ;;  %v1463_v35 = vld [vmem:[#allocation2 + $0xf8] sm:$0xff]  ;;  %v1462_v21 = vld [vmem:[#allocation2 + $0xf0] sm:$0xff]  ;;  %v1430_v26 = vld [vmem:[%s4167_s4] sm:$0xff] }
 0x424   :  { %1426 = vst [vmem:[#allocation2 + $0x110] sm:$0x3f] %v1422_v27  ;;  %1427 = vst [vmem:[#allocation2 + $0x118] sm:$0x3f] %v1423_v48  ;;  %v2414_v22 = vpack.c.bf16 %v1463_v35, %v1459_v16  ;;  %v2416_v24 = vpack.c.bf16 %v1462_v21, %v1458_v8  ;;  %v1431_v42 = vld [vmem:[%s4167_s4 + $0x8] sm:$0xff] }
 0x425   :  { %2393 = vmatprep.subr.bf16.mxu0 %v2392_v52 }
 0x426   :  { %2395 = vmatpush1.bf16.msra.mxu0 %v2394_v10  ;;  %2415 = vmatprep.subr.bf16.mxu1 %v2414_v22 }
 0x427   :  { %2417 = vmatpush1.bf16.msra.mxu1 %v2416_v24  ;;  %v1464_v53 = vld [vmem:[#allocation2 + $0x100] sm:$0xff] }
 0x428   :  { %v2399_v3 = vpack.c.bf16 %v1468_v13, %v1464_v53 }
 0x42a   :  { %v1465_v31 = vld [vmem:[#allocation2 + $0x108] sm:$0xff] }
 0x42b   :  { %v2396_v59 = vpack.c.bf16 %v1469_v32, %v1465_v31  ;;  %v1467_v62 = vld [vmem:[#allocation2 + $0x118] sm:$0xff]  ;;  %v1466_v28 = vld [vmem:[#allocation2 + $0x110] sm:$0xff] }
 0x42c   :  { %v2418_v2 = vpack.c.bf16 %v1471_v15, %v1467_v62  ;;  %v2421_v39 = vpack.c.bf16 %v1470_v14, %v1466_v28  ;;  %v1983_v62 = vld [vmem:[%s4168_s5 + $0x8] sm:$0x3f] }
 0x42d   :  { %2398 = vmatprep.subr.msk.bf16.mxu0 %vm2954_vm11, %v2396_v59 }
 0x42e   :  { %2401 = vmatpush1.bf16.msk.msra.mxu0 %vm2954_vm11, %v2399_v3  ;;  %2420 = vmatprep.subr.msk.bf16.mxu1 %vm2954_vm11, %v2418_v2 }
 0x42f   :  { %2423 = vmatpush1.bf16.msk.msra.mxu1 %vm2954_vm11, %v2421_v39 }
 0x431   :  { %2252 = vmatmul.mubr.msk.f32.vlgmr.msra.gmra.mrb[6].mxu0 %vm507_vm12, %v1430_v26 }
 0x432   :  { %2256 = vmatmul.mubr.msk.f32.vlgmr.msra.gmra.mrb[6].mxu1 %vm507_vm12, %v1430_v26  ;;  %1560 = vmatprep.mubr.f32.mxu0 %v4294_v1 }
 0x433   :  { %1637 = vmatprep.mubr.f32.mxu1 %v4294_v1 }
 0x435   :  { %2253 = vmatmul.mubr.msk.f32.gmra.mrb[8].mxu0 %vm507_vm12, %v1431_v42 }
 0x436   :  { %2257 = vmatmul.mubr.msk.f32.gmra.mrb[8].mxu1 %vm507_vm12, %v1431_v42  ;;  %2260 = vmatprep.mubr.msk.f32.mxu0 %vm1098_vm13, %v1983_v62 }
 0x437   :  { %2263 = vmatprep.mubr.msk.f32.mxu1 %vm1098_vm13, %v1983_v62 }
 0x504   :  { %v1556_v18 = vpop.f32.mrb[6].mxu0 }
 0x505   :  { %v3656_v54 = vmax.f32 %v1556_v18, 0.0  ;;  %v1558_v46 = vpop.f32.mrb[7].mxu0  ;;  %v1633_v27 = vpop.f32.mrb[6].mxu1 }
 0x506   :  { %v3658_v48 = vmax.f32 %v1558_v46, 0.0  ;;  %v3660_v63 = vmax.f32 %v1633_v27, 0.0  ;;  %v1635_v45 = vpop.f32.mrb[7].mxu1 }
 0x507   :  { %1812 = vst [vmem:[#allocation2 + $0x100] sm:$0xff] %v3656_v54  ;;  %1652 = vrot.lane.b32.xlu0 %v3656_v54, %s2524_s30  ;;  %v3665_v1 = vmax.f32 %v1635_v45, 0.0 }
 0x508   :  { %4299 = vst [vmem:[#allocation24_spill] sm:$0xff] %v3660_v63  ;;  %1813 = vst [vmem:[#allocation2 + $0x108] sm:$0xff] %v3658_v48  ;;  %v1562_v16 = vpop.f32.mrb[8].mxu0 }
 0x509   :  { %1814 = vst [vmem:[#allocation2 + $0x110] sm:$0xff] %v3660_v63  ;;  %v3669_v52 = vmax.f32 %v1562_v16, 0.0  ;;  %1815 = vst [vmem:[#allocation2 + $0x118] sm:$0xff] %v3665_v1  ;;  %v1564_v35 = vpop.f32.mrb[9].mxu0  ;;  %v1639_v8 = vpop.f32.mrb[8].mxu1 }
 0x50a   :  { %v3672_v21 = vmax.f32 %v1564_v35, 0.0  ;;  %v3674_v10 = vmax.f32 %v1639_v8, 0.0  ;;  %v1641_v22 = vpop.f32.mrb[9].mxu1 }
 0x50b   :  { %1816 = vst [vmem:[#allocation2 + $0x120] sm:$0xff] %v3669_v52  ;;  %v3677_v24 = vmax.f32 %v1641_v22, 0.0  ;;  %1660 = vrot.lane.b32.xlu0 %v3660_v63, %s2524_s30  ;;  %1654 = vrot.lane.b32.xlu1 %v3669_v52, %s2524_s30 }
 0x50c   :  { %4300 = vst [vmem:[#allocation22_spill] sm:$0xff] %v3674_v10  ;;  %1817 = vst [vmem:[#allocation2 + $0x128] sm:$0xff] %v3672_v21 }
 0x50d   :  { %1818 = vst [vmem:[#allocation2 + $0x130] sm:$0xff] %v3674_v10  ;;  %1819 = vst [vmem:[#allocation2 + $0x138] sm:$0xff] %v3677_v24 }
 0x50f   :  { %1692 = vrot.lane.b32.xlu0 %v3656_v54, %s2525_s10  ;;  %1662 = vrot.lane.b32.xlu1 %v3674_v10, %s2524_s30 }
 0x513   :  { %1700 = vrot.lane.b32.xlu0 %v3660_v63, %s2525_s10  ;;  %1694 = vrot.lane.b32.xlu1 %v3669_v52, %s2525_s10 }
 0x517   :  { %1732 = vrot.lane.b32.xlu0 %v3656_v54, %s2526_s1  ;;  %1702 = vrot.lane.b32.xlu1 %v3674_v10, %s2525_s10 }
 0x51b   :  { %1740 = vrot.lane.b32.xlu0 %v3660_v63, %s2526_s1  ;;  %1734 = vrot.lane.b32.xlu1 %v3669_v52, %s2526_s1 }
 0x51f   :  { %1772 = vrot.lane.b32.xlu0 %v3656_v54, %s2527_s11  ;;  %1742 = vrot.lane.b32.xlu1 %v3674_v10, %s2526_s1 }
 0x523   :  { %1780 = vrot.lane.b32.xlu0 %v3660_v63, %s2527_s11  ;;  %1774 = vrot.lane.b32.xlu1 %v3669_v52, %s2527_s11 }
 0x527   :  { %1820 = vrot.lane.b32.xlu0 %v3656_v54, %s2528_s12  ;;  %1782 = vrot.lane.b32.xlu1 %v3674_v10, %s2527_s11 }
 0x52b   :  { %1828 = vrot.lane.b32.xlu0 %v3660_v63, %s2528_s12  ;;  %1822 = vrot.lane.b32.xlu1 %v3669_v52, %s2528_s12 }
 0x52f   :  { %1860 = vrot.lane.b32.xlu0 %v3656_v54, %s2529_s13  ;;  %1830 = vrot.lane.b32.xlu1 %v3674_v10, %s2528_s12 }
 0x533   :  { %1868 = vrot.lane.b32.xlu0 %v3660_v63, %s2529_s13  ;;  %1862 = vrot.lane.b32.xlu1 %v3669_v52, %s2529_s13 }
 0x537   :  { %1900 = vrot.lane.b32.xlu0 %v3656_v54, %s2531_s14  ;;  %1870 = vrot.lane.b32.xlu1 %v3674_v10, %s2529_s13 }
 0x53b   :  { %1908 = vrot.lane.b32.xlu0 %v3660_v63, %s2531_s14  ;;  %1902 = vrot.lane.b32.xlu1 %v3669_v52, %s2531_s14 }
 0x53f   :  { %1940 = vrot.lane.b32.xlu0 %v3656_v54, %s2532_s15  ;;  %1910 = vrot.lane.b32.xlu1 %v3674_v10, %s2531_s14 }
 0x543   :  { %1948 = vrot.lane.b32.xlu0 %v3660_v63, %s2532_s15  ;;  %1942 = vrot.lane.b32.xlu1 %v3669_v52, %s2532_s15 }
 0x547   :  { %1656 = vrot.lane.b32.xlu0 %v3658_v48, %s2524_s30  ;;  %1950 = vrot.lane.b32.xlu1 %v3674_v10, %s2532_s15 }
 0x54b   :  { %1664 = vrot.lane.b32.xlu0 %v3665_v1, %s2524_s30  ;;  %1658 = vrot.lane.b32.xlu1 %v3672_v21, %s2524_s30 }
 0x54f   :  { %1696 = vrot.lane.b32.xlu0 %v3658_v48, %s2525_s10  ;;  %1666 = vrot.lane.b32.xlu1 %v3677_v24, %s2524_s30 }
 0x553   :  { %1704 = vrot.lane.b32.xlu0 %v3665_v1, %s2525_s10  ;;  %1698 = vrot.lane.b32.xlu1 %v3672_v21, %s2525_s10 }
 0x557   :  { %1736 = vrot.lane.b32.xlu0 %v3658_v48, %s2526_s1  ;;  %1706 = vrot.lane.b32.xlu1 %v3677_v24, %s2525_s10 }
 0x55b   :  { %1744 = vrot.lane.b32.xlu0 %v3665_v1, %s2526_s1  ;;  %1738 = vrot.lane.b32.xlu1 %v3672_v21, %s2526_s1 }
 0x55f   :  { %1776 = vrot.lane.b32.xlu0 %v3658_v48, %s2527_s11  ;;  %1746 = vrot.lane.b32.xlu1 %v3677_v24, %s2526_s1 }
 0x563   :  { %1784 = vrot.lane.b32.xlu0 %v3665_v1, %s2527_s11  ;;  %1778 = vrot.lane.b32.xlu1 %v3672_v21, %s2527_s11 }
 0x567   :  { %1824 = vrot.lane.b32.xlu0 %v3658_v48, %s2528_s12  ;;  %1786 = vrot.lane.b32.xlu1 %v3677_v24, %s2527_s11 }
 0x56b   :  { %1832 = vrot.lane.b32.xlu0 %v3665_v1, %s2528_s12  ;;  %1826 = vrot.lane.b32.xlu1 %v3672_v21, %s2528_s12 }
 0x56f   :  { %1864 = vrot.lane.b32.xlu0 %v3658_v48, %s2529_s13  ;;  %1834 = vrot.lane.b32.xlu1 %v3677_v24, %s2528_s12 }
 0x573   :  { %1872 = vrot.lane.b32.xlu0 %v3665_v1, %s2529_s13  ;;  %1866 = vrot.lane.b32.xlu1 %v3672_v21, %s2529_s13 }
 0x577   :  { %1904 = vrot.lane.b32.xlu0 %v3658_v48, %s2531_s14  ;;  %1874 = vrot.lane.b32.xlu1 %v3677_v24, %s2529_s13 }
 0x579   :  { %v1653_v53 = vpop.permute.xlu0 %1652 }
 0x57b   :  { %1912 = vrot.lane.b32.xlu0 %v3665_v1, %s2531_s14  ;;  %1906 = vrot.lane.b32.xlu1 %v3672_v21, %s2531_s14 }
 0x57d   :  { %v1661_v15 = vpop.permute.xlu0 %1660  ;;  %v3802_v14 = vpop.permute.xlu1 %1654 }
 0x57f   :  { %1944 = vrot.lane.b32.xlu0 %v3658_v48, %s2532_s15  ;;  %1914 = vrot.lane.b32.xlu1 %v3677_v24, %s2531_s14 }
 0x581   :  { %v3808_v31 = vpop.permute.xlu0 %1692  ;;  %v1663_v59 = vpop.permute.xlu1 %1662 }
 0x583   :  { %1952 = vrot.lane.b32.xlu0 %v3665_v1, %s2532_s15  ;;  %1946 = vrot.lane.b32.xlu1 %v3672_v21, %s2532_s15 }
 0x585   :  { %v3819_v28 = vpop.permute.xlu0 %1700  ;;  %v3821_v3 = vpop.permute.xlu1 %1694 }
 0x587   :  { %1954 = vrot.lane.b32.xlu1 %v3677_v24, %s2532_s15 }
 0x589   :  { %v3825_v2 = vpop.permute.xlu0 %1732  ;;  %v3827_v39 = vpop.permute.xlu1 %1702 }
 0x58d   :  { %v3829_v34 = vpop.permute.xlu0 %1740  ;;  %v3831_v26 = vpop.permute.xlu1 %1734 }
 0x591   :  { %v3833_v42 = vpop.permute.xlu0 %1772  ;;  %v3835_v18 = vpop.permute.xlu1 %1742 }
 0x595   :  { %v3837_v46 = vpop.permute.xlu0 %1780  ;;  %v3839_v27 = vpop.permute.xlu1 %1774 }
 0x599   :  { %v3841_v45 = vpop.permute.xlu0 %1820  ;;  %v3843_v16 = vpop.permute.xlu1 %1782 }
 0x59d   :  { %v3845_v35 = vpop.permute.xlu0 %1828  ;;  %v3847_v8 = vpop.permute.xlu1 %1822 }
 0x5a1   :  { %v3849_v22 = vpop.permute.xlu0 %1860  ;;  %v3851_v62 = vpop.permute.xlu1 %1830 }
 0x5a5   :  { %v3853_v13 = vpop.permute.xlu0 %1868  ;;  %v3855_v32 = vpop.permute.xlu1 %1862 }
 0x5a6   :  { %4301 = vst [vmem:[#allocation5_spill] sm:$0xff] %v3855_v32 }
 0x5a9   :  { %v3857_v23 = vpop.permute.xlu0 %1900  ;;  %v3859_v7 = vpop.permute.xlu1 %1870 }
 0x5aa   :  { %4302 = vst [vmem:[#allocation7_spill] sm:$0xff] %v3857_v23  ;;  %4303 = vst [vmem:[#allocation25_spill] sm:$0xff] %v3859_v7 }
 0x5ad   :  { %v3861_v44 = vpop.permute.xlu0 %1908  ;;  %v3863_v6 = vpop.permute.xlu1 %1902 }
 0x5ae   :  { %4304 = vst [vmem:[#allocation23_spill] sm:$0xff] %v3861_v44  ;;  %4305 = vst [vmem:[#allocation28_spill] sm:$0xff] %v3863_v6 }
 0x5b1   :  { %v3865_v29 = vpop.permute.xlu0 %1940  ;;  %v3867_v5 = vpop.permute.xlu1 %1910 }
 0x5b2   :  { %4306 = vst [vmem:[#allocation26_spill] sm:$0xff] %v3865_v29  ;;  %4307 = vst [vmem:[#allocation29_spill] sm:$0xff] %v3867_v5 }
 0x5b5   :  { %v3869_v50 = vpop.permute.xlu0 %1948  ;;  %v3871_v17 = vpop.permute.xlu1 %1942 }
 0x5b6   :  { %4308 = vst [vmem:[#allocation27_spill] sm:$0xff] %v3869_v50  ;;  %4309 = vst [vmem:[#allocation31_spill] sm:$0xff] %v3871_v17 }
 0x5b9   :  { %v1657_v12 = vpop.permute.xlu0 %1656  ;;  %v3873_v43 = vpop.permute.xlu1 %1950 }
 0x5ba   :  { %4310 = vst [vmem:[#allocation30_spill] sm:$0xff] %v3873_v43  ;;  %v1670_v23 = vsel %vm126_vm1, %v1657_v12, %v1661_v15  ;;  %v1672_v32 = vsel %vm126_vm1, %v1653_v53, %v1657_v12 }
 0x5bb   :  { %v1677_v44 = vmul.f32 %v1672_v32, %v4296_v0  ;;  %v1678_v6 = vmul.f32 %v1670_v23, %v4297_v47 }
 0x5bd   :  { %1685 = vst [vmem:[#allocation2 + $0x8] sm:$0xff] %v1677_v44  ;;  %1686 = vst [vmem:[#allocation2 + $0x10] sm:$0xff] %v1678_v6  ;;  %v1665_v29 = vpop.permute.xlu0 %1664  ;;  %v1659_v5 = vpop.permute.xlu1 %1658 }
 0x5be   :  { %v1668_v17 = vsel %vm126_vm1, %v1661_v15, %v1665_v29  ;;  %v1674_v43 = vsel %vm126_vm1, %v1665_v29, %v1653_v53  ;;  %v1671_v50 = vsel %vm126_vm1, %v1659_v5, %v1663_v59  ;;  %v1673_v12 = vsel %vm126_vm1, %v3802_v14, %v1659_v5 }
 0x5bf   :  { %v1676_v32 = vmul.f32 %v1674_v43, %v2728_v19  ;;  %v1679_v23 = vmul.f32 %v1668_v17, %v2731_v20  ;;  %v1681_v7 = vmul.f32 %v1673_v12, %v4296_v0  ;;  %v1682_v63 = vmul.f32 %v1671_v50, %v4297_v47 }
 0x5c1   :  { %1684 = vst [vmem:[#allocation2] sm:$0xff] %v1676_v32  ;;  %1687 = vst [vmem:[#allocation2 + $0x18] sm:$0xff] %v1679_v23  ;;  %v1697_v29 = vpop.permute.xlu0 %1696  ;;  %v1667_v53 = vpop.permute.xlu1 %1666  ;;  %v2424_v15 = vpack.c.bf16 %v1681_v7, %v1677_v44 }
 0x5c2   :  { %1689 = vst [vmem:[#allocation2 + $0x28] sm:$0xff] %v1681_v7  ;;  %1690 = vst [vmem:[#allocation2 + $0x30] sm:$0xff] %v1682_v63  ;;  %v1710_v10 = vsel %vm168_vm2, %v1697_v29, %v3819_v28  ;;  %v1712_v43 = vsel %vm168_vm2, %v3808_v31, %v1697_v29  ;;  %v1669_v17 = vsel %vm126_vm1, %v1663_v59, %v1667_v53 }
 0x5c3   :  { %v1675_v50 = vsel %vm126_vm1, %v1667_v53, %v3802_v14  ;;  %v1717_v5 = vmul.f32 %v1712_v43, %v2741_v25  ;;  %v3907_v0 = vmul.f32 %v1710_v10, %v2767_v40  ;;  %v1683_v7 = vmul.f32 %v1669_v17, %v2731_v20  ;;  %2425 = vmatprep.subr.bf16.mxu0 %v2424_v15 }
 0x5c4   :  { %v1680_v44 = vmul.f32 %v1675_v50, %v2728_v19  ;;  %v2462_v14 = vpack.c.bf16 %v1682_v63, %v1678_v6 }
 0x5c5   :  { %1725 = vst [vmem:[#allocation2 + $0x48] sm:$0xff] %v1717_v5  ;;  %1726 = vst [vmem:[#allocation2 + $0x50] sm:$0xff] %v3907_v0  ;;  %v1705_v47 = vpop.permute.xlu0 %1704  ;;  %v1699_v59 = vpop.permute.xlu1 %1698  ;;  %v2460_v29 = vpack.c.bf16 %v1683_v7, %v1679_v23 }
 0x5c6   :  { %1688 = vst [vmem:[#allocation2 + $0x20] sm:$0xff] %v1680_v44  ;;  %1691 = vst [vmem:[#allocation2 + $0x38] sm:$0xff] %v1683_v7  ;;  %v2426_v12 = vpack.c.bf16 %v1680_v44, %v1676_v32  ;;  %v1708_v10 = vsel %vm168_vm2, %v3819_v28, %v1705_v47  ;;  %v1714_v19 = vsel %vm168_vm2, %v1705_v47, %v3808_v31 }
 0x5c7   :  { %v1711_v20 = vsel %vm168_vm2, %v1699_v59, %v3827_v39  ;;  %v1713_v53 = vsel %vm168_vm2, %v3821_v3, %v1699_v59  ;;  %v1716_v32 = vmul.f32 %v1714_v19, %v2763_v38  ;;  %v1719_v6 = vmul.f32 %v1708_v10, %v2770_v41  ;;  %2461 = vmatprep.subr.bf16.mxu1 %v2460_v29 }
 0x5c8   :  { %v1721_v63 = vmul.f32 %v1713_v53, %v2741_v25  ;;  %v1722_v28 = vmul.f32 %v1711_v20, %v2767_v40  ;;  %2427 = vmatpush1.bf16.msra.mxu0 %v2426_v12  ;;  %2463 = vmatpush1.bf16.msra.mxu1 %v2462_v14 }
 0x5c9   :  { %1724 = vst [vmem:[#allocation2 + $0x40] sm:$0xff] %v1716_v32  ;;  %1727 = vst [vmem:[#allocation2 + $0x58] sm:$0xff] %v1719_v6  ;;  %v1737_v31 = vpop.permute.xlu0 %1736  ;;  %v1707_v23 = vpop.permute.xlu1 %1706 }
 0x5ca   :  { %1729 = vst [vmem:[#allocation2 + $0x68] sm:$0xff] %v1721_v63  ;;  %1730 = vst [vmem:[#allocation2 + $0x70] sm:$0xff] %v1722_v28  ;;  %v2428_v15 = vpack.c.bf16 %v1721_v63, %v1717_v5  ;;  %v1750_v43 = vsel %vm210_vm3, %v1737_v31, %v3829_v34  ;;  %v1752_v25 = vsel %vm210_vm3, %v3825_v2, %v1737_v31 }
 0x5cb   :  { %v1709_v40 = vsel %vm168_vm2, %v3827_v39, %v1707_v23  ;;  %v1715_v17 = vsel %vm168_vm2, %v1707_v23, %v3821_v3  ;;  %v1757_v50 = vmul.f32 %v1752_v25, %v2784_v51  ;;  %v3942_v5 = vmul.f32 %v1750_v43, %v2793_v57 }
 0x5cc   :  { %v1720_v44 = vmul.f32 %v1715_v17, %v2763_v38  ;;  %v1723_v7 = vmul.f32 %v1709_v40, %v2770_v41  ;;  %2429 = vmatprep.subr.bf16.mxu0 %v2428_v15  ;;  %v2466_v3 = vpack.c.bf16 %v1722_v28, %v3907_v0 }
 0x5cd   :  { %1765 = vst [vmem:[#allocation2 + $0x88] sm:$0xff] %v1757_v50  ;;  %1766 = vst [vmem:[#allocation2 + $0x90] sm:$0xff] %v3942_v5  ;;  %v1745_v39 = vpop.permute.xlu0 %1744  ;;  %v1739_v47 = vpop.permute.xlu1 %1738 }
 0x5ce   :  { %1728 = vst [vmem:[#allocation2 + $0x60] sm:$0xff] %v1720_v44  ;;  %1731 = vst [vmem:[#allocation2 + $0x78] sm:$0xff] %v1723_v7  ;;  %v2430_v59 = vpack.c.bf16 %v1720_v44, %v1716_v32  ;;  %v2464_v12 = vpack.c.bf16 %v1723_v7, %v1719_v6  ;;  %v1748_v29 = vsel %vm210_vm3, %v3829_v34, %v1745_v39 }
 0x5cf   :  { %v1754_v38 = vsel %vm210_vm3, %v1745_v39, %v3825_v2  ;;  %v1751_v41 = vsel %vm210_vm3, %v1739_v47, %v3835_v18  ;;  %v1753_v14 = vsel %vm210_vm3, %v3831_v26, %v1739_v47  ;;  %v1759_v0 = vmul.f32 %v1748_v29, %v2796_v58 }
 0x5d0   :  { %v1756_v10 = vmul.f32 %v1754_v38, %v2790_v56  ;;  %v1761_v19 = vmul.f32 %v1753_v14, %v2784_v51  ;;  %v1762_v34 = vmul.f32 %v1751_v41, %v2793_v57  ;;  %2431 = vmatpush1.bf16.msra.mxu0 %v2430_v59  ;;  %2465 = vmatprep.subr.bf16.mxu1 %v2464_v12 }
 0x5d1   :  { %1767 = vst [vmem:[#allocation2 + $0x98] sm:$0xff] %v1759_v0  ;;  %v1777_v2 = vpop.permute.xlu0 %1776  ;;  %v1747_v20 = vpop.permute.xlu1 %1746  ;;  %2467 = vmatpush1.bf16.msra.mxu1 %v2466_v3 }
 0x5d2   :  { %1764 = vst [vmem:[#allocation2 + $0x80] sm:$0xff] %v1756_v10  ;;  %1769 = vst [vmem:[#allocation2 + $0xa8] sm:$0xff] %v1761_v19  ;;  %v2432_v53 = vpack.c.bf16 %v1761_v19, %v1757_v50  ;;  %v1790_v32 = vsel %vm252_vm4, %v1777_v2, %v3837_v46  ;;  %v1792_v51 = vsel %vm252_vm4, %v3833_v42, %v1777_v2 }
 0x5d3   :  { %1770 = vst [vmem:[#allocation2 + $0xb0] sm:$0xff] %v1762_v34  ;;  %v1749_v57 = vsel %vm210_vm3, %v3835_v18, %v1747_v20  ;;  %v1755_v6 = vsel %vm210_vm3, %v1747_v20, %v3831_v26  ;;  %v1797_v63 = vmul.f32 %v1792_v51, %v2810_v9  ;;  %v1798_v28 = vmul.f32 %v1790_v32, %v2821_v36 }
 0x5d4   :  { %v1760_v31 = vmul.f32 %v1755_v6, %v2790_v56  ;;  %v1763_v23 = vmul.f32 %v1749_v57, %v2796_v58  ;;  %2433 = vmatprep.subr.bf16.mxu0 %v2432_v53  ;;  %v2470_v40 = vpack.c.bf16 %v1762_v34, %v3942_v5 }
 0x5d5   :  { %1805 = vst [vmem:[#allocation2 + $0xc8] sm:$0xff] %v1797_v63  ;;  %1806 = vst [vmem:[#allocation2 + $0xd0] sm:$0xff] %v1798_v28  ;;  %v1785_v15 = vpop.permute.xlu0 %1784  ;;  %v1779_v43 = vpop.permute.xlu1 %1778 }
 0x5d6   :  { %1768 = vst [vmem:[#allocation2 + $0xa0] sm:$0xff] %v1760_v31  ;;  %1771 = vst [vmem:[#allocation2 + $0xb8] sm:$0xff] %v1763_v23  ;;  %v2434_v18 = vpack.c.bf16 %v1760_v31, %v1756_v10  ;;  %v2468_v25 = vpack.c.bf16 %v1763_v23, %v1759_v0  ;;  %v1788_v26 = vsel %vm252_vm4, %v3837_v46, %v1785_v15  ;;  %v4312_v23 = vld [vmem:[#allocation22_spill] sm:$0xff] }
 0x5d7   :  { %v1794_v56 = vsel %vm252_vm4, %v1785_v15, %v3833_v42  ;;  %v1791_v58 = vsel %vm252_vm4, %v1779_v43, %v3843_v16  ;;  %v1793_v17 = vsel %vm252_vm4, %v3839_v27, %v1779_v43  ;;  %v1799_v5 = vmul.f32 %v1788_v26, %v2825_v37  ;;  %v4313_v15 = vld [vmem:[#allocation24_spill] sm:$0xff] }
 0x5d8   :  { %v1796_v50 = vmul.f32 %v1794_v56, %v2816_v33  ;;  %v1801_v44 = vmul.f32 %v1793_v17, %v2810_v9  ;;  %v1802_v46 = vmul.f32 %v1791_v58, %v2821_v36  ;;  %2435 = vmatpush1.bf16.msra.mxu0 %v2434_v18  ;;  %2469 = vmatprep.subr.bf16.mxu1 %v2468_v25  ;;  %v4317_v56 = vld [vmem:[#allocation8_spill] sm:$0xff]  ;;  %v4318_v17 = vld [vmem:[#allocation6_spill] sm:$0xff] }
 0x5d9   :  { %1807 = vst [vmem:[#allocation2 + $0xd8] sm:$0xff] %v1799_v5  ;;  %v1825_v42 = vpop.permute.xlu0 %1824  ;;  %v1787_v7 = vpop.permute.xlu1 %1786  ;;  %2471 = vmatpush1.bf16.msra.mxu1 %v2470_v40  ;;  %v4314_v43 = vpack.c.bf16 %v4312_v23, %v4313_v15  ;;  %v4316_v40 = vld [vmem:[#allocation5_spill] sm:$0xff] }
 0x5da   :  { %1804 = vst [vmem:[#allocation2 + $0xc0] sm:$0xff] %v1796_v50  ;;  %1809 = vst [vmem:[#allocation2 + $0xe8] sm:$0xff] %v1801_v44  ;;  %v2436_v39 = vpack.c.bf16 %v1801_v44, %v1797_v63  ;;  %v1838_v47 = vsel %vm298_vm5, %v1825_v42, %v3845_v35  ;;  %v1840_v9 = vsel %vm298_vm5, %v3841_v45, %v1825_v42 }
 0x5db   :  { %1810 = vst [vmem:[#allocation2 + $0xf0] sm:$0xff] %v1802_v46  ;;  %v1789_v36 = vsel %vm252_vm4, %v3843_v16, %v1787_v7  ;;  %v1795_v59 = vsel %vm252_vm4, %v1787_v7, %v3839_v27  ;;  %v1844_v12 = vmul.f32 %v1840_v9, %v2839_v49  ;;  %v1845_v3 = vmul.f32 %v1838_v47, %v2855_v60  ;;  %v4319_v7 = vld [vmem:[#allocation23_spill] sm:$0xff] }
 0x5dc   :  { %v1800_v29 = vmul.f32 %v1795_v59, %v2816_v33  ;;  %v1803_v38 = vmul.f32 %v1789_v36, %v2825_v37  ;;  %2437 = vmatprep.subr.bf16.mxu0 %v2436_v39  ;;  %v2440_v16 = vpack.c.bf16 %v3672_v21, %v3658_v48  ;;  %v2474_v19 = vpack.c.bf16 %v1802_v46, %v1798_v28  ;;  %v4320_v47 = vld [vmem:[#allocation7_spill] sm:$0xff]  ;;  %v4321_v36 = vld [vmem:[#allocation9_spill] sm:$0xff] }
 0x5dd   :  { %v1833_v41 = vpop.permute.xlu0 %1832  ;;  %v1827_v14 = vpop.permute.xlu1 %1826  ;;  %v4311_v28 = vpack.c.bf16 %v3669_v52, %v3656_v54  ;;  %v4315_v54 = vld [vmem:[#allocation25_spill] sm:$0xff] }
 0x5de   :  { %1808 = vst [vmem:[#allocation2 + $0xe0] sm:$0xff] %v1800_v29  ;;  %1811 = vst [vmem:[#allocation2 + $0xf8] sm:$0xff] %v1803_v38  ;;  %v2438_v10 = vpack.c.bf16 %v1800_v29, %v1796_v50  ;;  %v2472_v0 = vpack.c.bf16 %v1803_v38, %v1799_v5  ;;  %v1836_v27 = vsel %vm298_vm5, %v3845_v35, %v1833_v41 }
 0x5df   :  { %v1842_v33 = vsel %vm298_vm5, %v1833_v41, %v3841_v45  ;;  %v1839_v37 = vsel %vm298_vm5, %v1827_v14, %v3851_v62  ;;  %v1841_v34 = vsel %vm298_vm5, %v3847_v8, %v1827_v14  ;;  %v1846_v2 = vmul.f32 %v1836_v27, %v2859_v61  ;;  %v4323_v27 = vld [vmem:[#allocation29_spill] sm:$0xff] }
 0x5e0   :  { %v1847_v48 = vmul.f32 %v1842_v33, %v2850_v55  ;;  %v1848_v21 = vmul.f32 %v1841_v34, %v2839_v49  ;;  %v1849_v35 = vmul.f32 %v1839_v37, %v2855_v60  ;;  %2439 = vmatpush1.bf16.msra.mxu0 %v2438_v10  ;;  %2473 = vmatprep.subr.bf16.mxu1 %v2472_v0  ;;  %v4324_v37 = vld [vmem:[#allocation28_spill] sm:$0xff] }
 0x5e1   :  { %2441 = vmatprep.subr.bf16.mxu0 %v2440_v16  ;;  %v2476_v45 = vpack.c.bf16 %v3677_v24, %v3665_v1  ;;  %v1865_v20 = vpop.permute.xlu0 %1864  ;;  %v1835_v53 = vpop.permute.xlu1 %1834  ;;  %2475 = vmatpush1.bf16.msra.mxu1 %v2474_v19 }
 0x5e2   :  { %v2444_v32 = vpack.c.bf16 %v1849_v35, %v1845_v3  ;;  %v1878_v51 = vsel %vm340_vm6, %v1865_v20, %v3853_v13  ;;  %v1880_v49 = vsel %vm340_vm6, %v3849_v22, %v1865_v20  ;;  %v1837_v60 = vsel %vm298_vm5, %v3851_v62, %v1835_v53 }
 0x5e3   :  { %v1843_v1 = vsel %vm298_vm5, %v1835_v53, %v3847_v8  ;;  %2477 = vmatprep.subr.bf16.mxu1 %v2476_v45  ;;  %v1884_v24 = vmul.f32 %v1880_v49, %v4271_v30  ;;  %v1885_v57 = vmul.f32 %v1878_v51, %v4272_v4  ;;  %v1850_v6 = vmul.f32 %v1837_v60, %v2859_v61  ;;  %v4327_v60 = vld [vmem:[#allocation27_spill] sm:$0xff] }
 0x5e4   :  { %v1851_v63 = vmul.f32 %v1843_v1, %v2850_v55  ;;  %2443 = vmatpush1.bf16.msra.mxu0 %v4311_v28  ;;  %v2446_v8 = vpack.c.bf16 %v1848_v21, %v1844_v12  ;;  %v4322_v12 = vld [vmem:[#allocation11_spill] sm:$0xff]  ;;  %v4326_v21 = vld [vmem:[#allocation10_spill] sm:$0xff]  ;;  %v4329_v28 = vld [vmem:[#allocation13_spill] sm:$0xff] }
 0x5e5   :  { %2445 = vmatprep.subr.bf16.mxu0 %v2444_v32  ;;  %v1873_v31 = vpop.permute.xlu0 %1872  ;;  %v1867_v62 = vpop.permute.xlu1 %1866  ;;  %2479 = vmatpush1.bf16.msra.mxu1 %v4314_v43  ;;  %v2482_v25 = vpack.c.bf16 %v1850_v6, %v1846_v2  ;;  %v4325_v2 = vld [vmem:[#allocation12_spill] sm:$0xff] }
 0x5e6   :  { %v2480_v18 = vpack.c.bf16 %v1851_v63, %v1847_v48  ;;  %v1876_v61 = vsel %vm340_vm6, %v3853_v13, %v1873_v31  ;;  %v1882_v55 = vsel %vm340_vm6, %v1873_v31, %v3849_v22  ;;  %v1879_v52 = vsel %vm340_vm6, %v1867_v62, %v4315_v54 }
 0x5e7   :  { %v1881_v26 = vsel %vm340_vm6, %v4316_v40, %v1867_v62  ;;  %v1886_v58 = vmul.f32 %v1876_v61, %v4317_v56  ;;  %v1887_v50 = vmul.f32 %v1882_v55, %v4318_v17  ;;  %v1889_v13 = vmul.f32 %v1879_v52, %v4272_v4  ;;  %v4330_v62 = vld [vmem:[#allocation15_spill] sm:$0xff]  ;;  %v4331_v52 = vld [vmem:[#allocation30_spill] sm:$0xff] }
 0x5e8   :  { %v1888_v5 = vmul.f32 %v1881_v26, %v4271_v30  ;;  %2447 = vmatpush1.bf16.msra.mxu0 %v2446_v8  ;;  %2481 = vmatprep.subr.bf16.mxu1 %v2480_v18  ;;  %v4332_v26 = vld [vmem:[#allocation31_spill] sm:$0xff] }
 0x5e9   :  { %v1905_v44 = vpop.permute.xlu0 %1904  ;;  %v1875_v22 = vpop.permute.xlu1 %1874  ;;  %2483 = vmatpush1.bf16.msra.mxu1 %v2482_v25  ;;  %v2448_v46 = vpack.c.bf16 %v1889_v13, %v1885_v57 }
 0x5ea   :  { %v2450_v42 = vpack.c.bf16 %v1888_v5, %v1884_v24  ;;  %v1918_v39 = vsel %vm382_vm7, %v1905_v44, %v4319_v7  ;;  %v1920_v9 = vsel %vm382_vm7, %v4320_v47, %v1905_v44  ;;  %v1877_v30 = vsel %vm340_vm6, %v4315_v54, %v1875_v22  ;;  %v4328_v24 = vld [vmem:[#allocation26_spill] sm:$0xff] }
 0x5eb   :  { %v1883_v4 = vsel %vm340_vm6, %v1875_v22, %v4316_v40  ;;  %v1924_v59 = vmul.f32 %v1920_v9, %v4321_v36  ;;  %v1925_v3 = vmul.f32 %v1918_v39, %v4322_v12  ;;  %v1890_v29 = vmul.f32 %v1877_v30, %v4317_v56  ;;  %2449 = vmatprep.subr.bf16.mxu0 %v2448_v46 }
 0x5ec   :  { %v1891_v38 = vmul.f32 %v1883_v4, %v4318_v17  ;;  %2451 = vmatpush1.bf16.msra.mxu0 %v2450_v42 }
 0x5ed   :  { %v1913_v41 = vpop.permute.xlu0 %1912  ;;  %v1907_v14 = vpop.permute.xlu1 %1906  ;;  %v2486_v0 = vpack.c.bf16 %v1890_v29, %v1886_v58  ;;  %v4333_v58 = vld [vmem:[#allocation16_spill] sm:$0xff] }
 0x5ee   :  { %v2484_v10 = vpack.c.bf16 %v1891_v38, %v1887_v50  ;;  %v1916_v16 = vsel %vm382_vm7, %v4319_v7, %v1913_v41  ;;  %v1922_v19 = vsel %vm382_vm7, %v1913_v41, %v4320_v47  ;;  %v1919_v33 = vsel %vm382_vm7, %v1907_v14, %v4323_v27  ;;  %v4334_v50 = vld [vmem:[#allocation14_spill] sm:$0xff]  ;;  %v2057_v47 = vld [vmem:[#allocation2 + $0x248] sm:$0x1] }
 0x5ef   :  { %v1921_v34 = vsel %vm382_vm7, %v4324_v37, %v1907_v14  ;;  %v1926_v48 = vmul.f32 %v1916_v16, %v4325_v2  ;;  %v1927_v35 = vmul.f32 %v1922_v19, %v4326_v21  ;;  %v1929_v20 = vmul.f32 %v1919_v33, %v4322_v12  ;;  %v1982_v12 = vld [vmem:[%s4168_s5] sm:$0x3f] }
 0x5f0   :  { %v1928_v45 = vmul.f32 %v1921_v34, %v4321_v36  ;;  %2485 = vmatprep.subr.bf16.mxu1 %v2484_v10 }
 0x5f1   :  { %2487 = vmatpush1.bf16.msra.mxu1 %v2486_v0  ;;  %v1945_v53 = vpop.permute.xlu0 %1944  ;;  %v1915_v32 = vpop.permute.xlu1 %1914  ;;  %v2452_v51 = vpack.c.bf16 %v1929_v20, %v1925_v3  ;;  %v2059_v3 = vld [vmem:[#allocation2 + $0x258] sm:$0x1] }
 0x5f2   :  { %v2454_v49 = vpack.c.bf16 %v1928_v45, %v1924_v59  ;;  %v1958_v1 = vsel %vm424_vm8, %v1945_v53, %v4327_v60  ;;  %v1960_v57 = vsel %vm424_vm8, %v4328_v24, %v1945_v53  ;;  %v1917_v6 = vsel %vm382_vm7, %v4323_v27, %v1915_v32  ;;  %v2056_v59 = vld [vmem:[#allocation2 + $0x240] sm:$0x1] }
 0x5f3   :  { %v1923_v63 = vsel %vm382_vm7, %v1915_v32, %v4324_v37  ;;  %v1964_v31 = vmul.f32 %v1960_v57, %v4329_v28  ;;  %v1965_v23 = vmul.f32 %v1958_v1, %v4330_v62  ;;  %v1930_v15 = vmul.f32 %v1917_v6, %v4325_v2  ;;  %2453 = vmatprep.subr.bf16.mxu0 %v2452_v51 }
 0x5f4   :  { %v1931_v43 = vmul.f32 %v1923_v63, %v4326_v21  ;;  %2455 = vmatpush1.bf16.msra.mxu0 %v2454_v49 }
 0x5f5   :  { %v1953_v8 = vpop.permute.xlu0 %1952  ;;  %v1947_v18 = vpop.permute.xlu1 %1946  ;;  %v2490_v61 = vpack.c.bf16 %v1930_v15, %v1926_v48 }
 0x5f6   :  { %v2488_v25 = vpack.c.bf16 %v1931_v43, %v1927_v35  ;;  %v1956_v55 = vsel %vm424_vm8, %v4327_v60, %v1953_v8  ;;  %v1962_v54 = vsel %vm424_vm8, %v1953_v8, %v4328_v24  ;;  %v1959_v40 = vsel %vm424_vm8, %v1947_v18, %v4331_v52 }
 0x5f7   :  { %v1961_v56 = vsel %vm424_vm8, %v4332_v26, %v1947_v18  ;;  %v1966_v17 = vmul.f32 %v1956_v55, %v4333_v58  ;;  %v1967_v5 = vmul.f32 %v1962_v54, %v4334_v50  ;;  %v1969_v44 = vmul.f32 %v1959_v40, %v4330_v62 }
 0x5f8   :  { %v1968_v13 = vmul.f32 %v1961_v56, %v4329_v28  ;;  %2489 = vmatprep.subr.bf16.mxu1 %v2488_v25 }
 0x5f9   :  { %2491 = vmatpush1.bf16.msra.mxu1 %v2490_v61  ;;  %v1955_v22 = vpop.permute.xlu1 %1954  ;;  %v2456_v46 = vpack.c.bf16 %v1969_v44, %v1965_v23 }
 0x5fa   :  { %v2458_v42 = vpack.c.bf16 %v1968_v13, %v1964_v31  ;;  %v1957_v7 = vsel %vm424_vm8, %v4331_v52, %v1955_v22  ;;  %v1963_v39 = vsel %vm424_vm8, %v1955_v22, %v4332_v26 }
 0x5fb   :  { %v1970_v9 = vmul.f32 %v1957_v7, %v4333_v58  ;;  %v1971_v30 = vmul.f32 %v1963_v39, %v4334_v50  ;;  %2457 = vmatprep.subr.bf16.mxu0 %v2456_v46 }
 0x5fc   :  { %2459 = vmatpush1.bf16.msra.mxu0 %v2458_v42 }
 0x5fd   :  { %v2492_v4 = vpack.c.bf16 %v1971_v30, %v1967_v5  ;;  %v2494_v36 = vpack.c.bf16 %v1970_v9, %v1966_v17  ;;  %2258 = vmatprep.subr.msk.mxu0 %vm514_vm9, %v2057_v47 }
 0x5ff   :  { %2493 = vmatprep.subr.bf16.mxu1 %v2492_v4 }
 0x600   :  { %2495 = vmatpush1.bf16.msra.mxu1 %v2494_v36  ;;  %2259 = vmatpush1.msk.msra.mxu0 %vm514_vm9, %v2056_v59 }
 0x601   :  { %2261 = vmatprep.subr.msk.mxu1 %vm514_vm9, %v2059_v3  ;;  %2140 = vmatmul.mubr.f32.vlgmr.msra.gmra.mrb[10].mxu0 %v1982_v12 }
 0x604   :  { %2262 = vmatpush1.msk.msra.mxu1 %vm514_vm9, %v2058_v11 }
 0x605   :  { %2211 = vmatmul.mubr.f32.vlgmr.msra.gmra.mrb[10].mxu1 %v1982_v12 }
 0x6d4   :  { %v2141_v29 = vpop.f32.mrb[10].mxu0 }
 0x6d5   :  { %2515 = vtanh.f32 %v2141_v29  ;;  %v2143_v38 = vpop.f32.mrb[11].mxu0 }
 0x6d6   :  { %2517 = vtanh.f32 %v2143_v38 }
 0x6d8   :  { %v2212_v41 = vpop.f32.mrb[10].mxu1 }
 0x6d9   :  { %2519 = vtanh.f32 %v2212_v41  ;;  %v2214_v14 = vpop.f32.mrb[11].mxu1 }
 0x6da   :  { %2521 = vtanh.f32 %v2214_v14 }
 0x6df   :  { %v2516_v10 = vpop.eup %2515 }
 0x6e0   :  { %v2518_v0 = vpop.eup %2517  ;;  %2221 = vst [vmem:[%s4169_s7] sm:$0x3f] %v2516_v10 }
 0x6e1   :  { %2222 = vst [vmem:[%s4169_s7 + $0x8] sm:$0x3f] %v2518_v0 }
 0x6e3   :  { %v2520_v16 = vpop.eup %2519 }
 0x6e4   :  { %v2522_v19 = vpop.eup %2521  ;;  %2223 = vst [vmem:[%s4169_s7 + $0x10] sm:$0x3f] %v2520_v16 }
 0x6e5   :  { %2224 = vst [vmem:[%s4169_s7 + $0x18] sm:$0x3f] %v2522_v19 }

</bundles_post_ra>
